<compile_context>
chip_gen: v7x
topology: tpu7x:2x2x1
jax: 0.10.0
libtpu: 0.0.40
codegen_flags: <defaults>
</compile_context>

<pallas_src>
import warnings

import numpy as np

import jax
import jax.numpy as jnp
from jax.experimental import pallas as pl
from jax.experimental.pallas import tpu as pltpu

EPS = 1e-5

# Silence the (harmless) notice if XLA decides it cannot reuse the donated residual buffer.
warnings.filterwarnings("ignore", message="Some donated buffers were not usable")


def _conv_bn_add_kernel(x_ref, w_ref, gb_ref, res_ref, o_ref, y_ref):
    # One grid step handles one contiguous block of output channels.
    #   x_ref:   (N, Cin, HW)   conv input, channel-major (same full block every step)
    #   w_ref:   (Cb, Cin)      1x1 conv weight rows for this channel block
    #   gb_ref:  (Cb, 2)        column 0 = gamma, column 1 = beta
    #   res_ref: (N, Cb, HW)    residual block (HBM buffer aliased with o_ref)
    #   o_ref:   (N, Cb, HW)    output block
    #   y_ref:   (N, Cb, HW)    f32 VMEM scratch holding the conv result
    n, _, hw = x_ref.shape
    cb = w_ref.shape[0]
    p_total = n * hw  # BN population: N * H * W

    w = w_ref[...]  # (Cb, Cin)

    # 1x1 conv == per-image matmul on the MXU; accumulate BN sums in the same pass.
    sum_y = jnp.zeros((cb, 1), jnp.float32)
    sum_y2 = jnp.zeros((cb, 1), jnp.float32)
    for i in range(n):  # n is static and tiny (1-2): unrolled at trace time
        y = jnp.dot(w, x_ref[i], preferred_element_type=jnp.float32)  # (Cb, HW)
        y_ref[i] = y  # park in VMEM; don't keep y's vregs live through the epilogue
        sum_y = sum_y + jnp.sum(y, axis=1, keepdims=True)
        sum_y2 = sum_y2 + jnp.sum(y * y, axis=1, keepdims=True)

    # Train-mode BatchNorm2d: biased batch statistics over (N, H, W), per output channel.
    mean = sum_y / p_total
    var = jnp.maximum(sum_y2 / p_total - mean * mean, 0.0)  # clamp one-pass cancellation
    inv_std = jax.lax.rsqrt(var + EPS)
    a = gb_ref[:, 0:1] * inv_std           # (Cb, 1) folded scale  (gamma * inv_std)
    b = gb_ref[:, 1:2] - mean * a          # (Cb, 1) folded shift  (beta - mean * a)

    # residual add: x111 + bn(conv(x117))
    for i in range(n):
        o_ref[i] = res_ref[i] + y_ref[i] * a + b


def _padded_block_bytes(shape, itemsize=4):
    """VMEM footprint of one f32 block with (8, 128) tile padding."""
    s = list(shape)
    s[-1] = -(-s[-1] // 128) * 128
    if len(s) >= 2:
        s[-2] = -(-s[-2] // 8) * 8
    return int(np.prod(s)) * itemsize


def conv_bn_add(x117, x111, weight, gamma, beta):
    """x117, x111: (N, C, H, W) float32 (NCHW). weight: (Cout, Cin) 1x1 conv weight."""
    n, c_in, h, w = x117.shape
    c_out = weight.shape[0]
    hw = h * w

    # Split Cout so (a) v7x's two TensorCores each take half, and (b) the weight DMA
    # double-buffers under the matmul on single-TC parts.
    n_blk = 2 if (c_out % 2 == 0 and (c_out // 2) % 8 == 0) else 1
    cb = c_out // n_blk

    # Free, contiguous reshapes -- no layout-shuffle kernels around the pallas_call.
    x_v = x117.reshape(n, c_in, hw)
    r_v = x111.reshape(n, c_out, hw)
    gb = jnp.stack([gamma, beta], axis=1)  # (Cout, 2): one DMA for both BN params

    # Padding-aware VMEM estimate: double-buffered in/out blocks + single-buffered scratch.
    vmem_bytes = (
        2 * _padded_block_bytes((n, c_in, hw))      # x
        + 2 * _padded_block_bytes((cb, c_in))       # weight block
        + 2 * _padded_block_bytes((cb, 2))          # gamma/beta block
        + 4 * _padded_block_bytes((n, cb, hw))      # res in + out
        + 1 * _padded_block_bytes((n, cb, hw)))     # y scratch
    assert vmem_bytes < 24 * 1024 * 1024, "shape too large for this blocking"
    vmem_limit = int(min(max(4 * vmem_bytes, 16 << 20), 32 << 20))

    flops = 2 * n * hw * c_in * c_out
    bytes_accessed = 4 * (x_v.size * n_blk + weight.size + gb.size + 2 * r_v.size)

    out = pl.pallas_call(
        _conv_bn_add_kernel,
        out_shape=jax.ShapeDtypeStruct((n, c_out, hw), jnp.float32),
        grid_spec=pltpu.PrefetchScalarGridSpec(
            num_scalar_prefetch=0,
            grid=(n_blk,),
            in_specs=[
                pl.BlockSpec((n, c_in, hw), lambda j: (0, 0, 0)),   # x: same block each step
                pl.BlockSpec((cb, c_in), lambda j: (j, 0)),          # weight rows for block j
                pl.BlockSpec((cb, 2), lambda j: (j, 0)),             # gamma/beta for block j
                pl.BlockSpec((n, cb, hw), lambda j: (0, j, 0)),      # residual block j
            ],
            out_specs=pl.BlockSpec((n, cb, hw), lambda j: (0, j, 0)),
            scratch_shapes=[pltpu.VMEM((n, cb, hw), jnp.float32)],
        ),
        input_output_aliases={3: 0},  # residual HBM buffer is reused as the output buffer
        compiler_params=pltpu.CompilerParams(
            dimension_semantics=("parallel",),   # Cout blocks are independent (per-channel BN)
            vmem_limit_bytes=vmem_limit),
        cost_estimate=pl.CostEstimate(
            flops=flops, transcendentals=c_out, bytes_accessed=bytes_accessed),
    )(x_v, weight, gb, r_v)

    return out.reshape(n, c_out, h, w)  # free reshape back to NCHW


if __name__ == "__main__":
    key = jax.random.PRNGKey(0)
    k1, k2, k3 = jax.random.split(key, 3)

    N, C, H, W = 1, 400, 7, 7  # matches the module spec (torch.Size([1, 400, 7, 7]))

    x117 = jax.random.normal(k1, (N, C, H, W), dtype=jnp.float32)
    x111 = jax.random.normal(k2, (N, C, H, W), dtype=jnp.float32)

    # Deterministic synthetic parameters: conv weight (Cout, Cin); BN gamma=1, beta=0.
    weight = 0.05 * jax.random.normal(k3, (C, C), dtype=jnp.float32)
    gamma = jnp.ones((C,), dtype=jnp.float32)
    beta = jnp.zeros((C,), dtype=jnp.float32)

    # Pure-JAX reference (computed and materialized *before* the call: x111 is donated).
    y_ref = jnp.einsum("oc,nchw->nohw", weight, x117,
                       precision=jax.lax.Precision.HIGHEST)
    m_ref = jnp.mean(y_ref, axis=(0, 2, 3), keepdims=True)
    v_ref = jnp.mean((y_ref - m_ref) ** 2, axis=(0, 2, 3), keepdims=True)
    bn_ref = ((y_ref - m_ref) * jax.lax.rsqrt(v_ref + EPS)
              * gamma.reshape(1, C, 1, 1) + beta.reshape(1, C, 1, 1))
    ref = jax.block_until_ready(x111 + bn_ref)

    fused = jax.jit(conv_bn_add, donate_argnums=(1,))  # x111's HBM buffer becomes the output
    out = fused(x117, x111, weight, gamma, beta)
    jax.block_until_ready(out)

    assert out.shape == (N, C, H, W)
    np.testing.assert_allclose(np.asarray(out), np.asarray(ref), rtol=5e-2, atol=5e-2)
    print("KERNEL_OK")
</pallas_src>

<mosaic_0001>
module attributes {stable_mosaic.version = 11 : i64} {
  func.func @_conv_bn_add_kernel(%arg0: i32, %arg1: memref<1x400x49xf32, #tpu.memory_space<vmem>>, %arg2: memref<200x400xf32, #tpu.memory_space<vmem>>, %arg3: memref<200x2xf32, #tpu.memory_space<vmem>>, %arg4: memref<1x200x49xf32, #tpu.memory_space<vmem>>, %arg5: memref<1x200x49xf32, #tpu.memory_space<vmem>>, %arg6: memref<1x200x49xf32, #tpu.memory_space<vmem>>) attributes {dimension_semantics = [#tpu.dimension_semantics<parallel>], iteration_bounds = array<i64: 2>, scalar_prefetch = 0 : i64, scratch_operands = 1 : i64, tpu.core_type = #tpu.core_type<tc>, window_params = [{pipeline_mode = #tpu.pipeline_mode<synchronous>, transform_indices = @transform_0, window_bounds = array<i64: 1, 400, 49>}, {transform_indices = @transform_1, window_bounds = array<i64: 200, 400>}, {transform_indices = @transform_2, window_bounds = array<i64: 200, 2>}, {transform_indices = @transform_3, window_bounds = array<i64: 1, 200, 49>}, {transform_indices = @transform_4, window_bounds = array<i64: 1, 200, 49>}]} {
    %c0 = arith.constant 0 : index
    %c0_0 = arith.constant 0 : index
    %0 = vector.load %arg2[%c0, %c0_0] : memref<200x400xf32, #tpu.memory_space<vmem>>, vector<200x400xf32>
    %cst = arith.constant 0.000000e+00 : f32
    %1 = vector.broadcast %cst : f32 to vector<200x1xf32>
    %cst_1 = arith.constant 0.000000e+00 : f32
    %2 = vector.broadcast %cst_1 : f32 to vector<200x1xf32>
    %c0_2 = arith.constant 0 : index
    %c0_3 = arith.constant 0 : index
    %c0_4 = arith.constant 0 : index
    %3 = vector.load %arg1[%c0_2, %c0_3, %c0_4] : memref<1x400x49xf32, #tpu.memory_space<vmem>>, vector<1x400x49xf32>
    %4 = vector.shape_cast %3 : vector<1x400x49xf32> to vector<400x49xf32>
    %cst_5 = arith.constant dense<0.000000e+00> : vector<200x49xf32>
    %5 = tpu.matmul %0, %4, %cst_5 {dimension_numbers = #tpu.dot_dimension_numbers<[1], [0], [0], [1], [0, 0, 1, 1], [], []>} : vector<200x400xf32>, vector<400x49xf32>, vector<200x49xf32> -> vector<200x49xf32>
    %c0_6 = arith.constant 0 : index
    %c0_7 = arith.constant 0 : index
    %c0_8 = arith.constant 0 : index
    %6 = vector.load %arg6[%c0_6, %c0_7, %c0_8] : memref<1x200x49xf32, #tpu.memory_space<vmem>>, vector<1x200x49xf32>
    %7 = vector.shape_cast %6 : vector<1x200x49xf32> to vector<200x49xf32>
    %8 = vector.shape_cast %5 : vector<200x49xf32> to vector<1x200x49xf32>
    tpu.vector_store %arg6[%c0_6, %c0_7, %c0_8], %8 {strides = array<i32>} : memref<1x200x49xf32, #tpu.memory_space<vmem>>, vector<1x200x49xf32>,
    %cst_9 = arith.constant dense<0.000000e+00> : vector<200xf32>
    %9 = vector.multi_reduction <add>, %5, %cst_9 [1] : vector<200x49xf32> to vector<200xf32>
    %10 = vector.shape_cast %9 : vector<200xf32> to vector<200x1xf32>
    %11 = arith.addf %1, %10 : vector<200x1xf32>
    %12 = arith.mulf %5, %5 : vector<200x49xf32>
    %cst_10 = arith.constant dense<0.000000e+00> : vector<200xf32>
    %13 = vector.multi_reduction <add>, %12, %cst_10 [1] : vector<200x49xf32> to vector<200xf32>
    %14 = vector.shape_cast %13 : vector<200xf32> to vector<200x1xf32>
    %15 = arith.addf %2, %14 : vector<200x1xf32>
    %cst_11 = arith.constant 4.900000e+01 : f32
    %16 = vector.broadcast %cst_11 : f32 to vector<200x1xf32>
    %17 = arith.divf %11, %16 : vector<200x1xf32>
    %cst_12 = arith.constant 4.900000e+01 : f32
    %18 = vector.broadcast %cst_12 : f32 to vector<200x1xf32>
    %19 = arith.divf %15, %18 : vector<200x1xf32>
    %20 = arith.mulf %17, %17 : vector<200x1xf32>
    %21 = arith.subf %19, %20 : vector<200x1xf32>
    %cst_13 = arith.constant 0.000000e+00 : f32
    %22 = vector.broadcast %cst_13 : f32 to vector<200x1xf32>
    %23 = arith.maximumf %21, %22 : vector<200x1xf32>
    %cst_14 = arith.constant 9.99999974E-6 : f32
    %24 = vector.broadcast %cst_14 : f32 to vector<200x1xf32>
    %25 = arith.addf %23, %24 : vector<200x1xf32>
    %26 = math.rsqrt %25 : vector<200x1xf32>
    %c0_15 = arith.constant 0 : index
    %c0_16 = arith.constant 0 : index
    %27 = vector.load %arg3[%c0_15, %c0_16] : memref<200x2xf32, #tpu.memory_space<vmem>>, vector<200x1xf32>
    %28 = arith.mulf %27, %26 : vector<200x1xf32>
    %c0_17 = arith.constant 0 : index
    %c1 = arith.constant 1 : index
    %29 = vector.load %arg3[%c0_17, %c1] : memref<200x2xf32, #tpu.memory_space<vmem>>, vector<200x1xf32>
    %30 = arith.mulf %17, %28 : vector<200x1xf32>
    %31 = arith.subf %29, %30 : vector<200x1xf32>
    %c0_18 = arith.constant 0 : index
    %c0_19 = arith.constant 0 : index
    %c0_20 = arith.constant 0 : index
    %32 = vector.load %arg4[%c0_18, %c0_19, %c0_20] : memref<1x200x49xf32, #tpu.memory_space<vmem>>, vector<1x200x49xf32>
    %33 = vector.shape_cast %32 : vector<1x200x49xf32> to vector<200x49xf32>
    %c0_21 = arith.constant 0 : index
    %c0_22 = arith.constant 0 : index
    %c0_23 = arith.constant 0 : index
    %34 = vector.load %arg6[%c0_21, %c0_22, %c0_23] : memref<1x200x49xf32, #tpu.memory_space<vmem>>, vector<1x200x49xf32>
    %35 = vector.shape_cast %34 : vector<1x200x49xf32> to vector<200x49xf32>
    %36 = vector.broadcast %28 : vector<200x1xf32> to vector<200x49xf32>
    %37 = arith.mulf %35, %36 : vector<200x49xf32>
    %38 = arith.addf %33, %37 : vector<200x49xf32>
    %39 = vector.broadcast %31 : vector<200x1xf32> to vector<200x49xf32>
    %40 = arith.addf %38, %39 : vector<200x49xf32>
    %c0_24 = arith.constant 0 : index
    %c0_25 = arith.constant 0 : index
    %c0_26 = arith.constant 0 : index
    %41 = vector.load %arg5[%c0_24, %c0_25, %c0_26] : memref<1x200x49xf32, #tpu.memory_space<vmem>>, vector<1x200x49xf32>
    %42 = vector.shape_cast %41 : vector<1x200x49xf32> to vector<200x49xf32>
    %43 = vector.shape_cast %40 : vector<200x49xf32> to vector<1x200x49xf32>
    tpu.vector_store %arg5[%c0_24, %c0_25, %c0_26], %43 {strides = array<i32>} : memref<1x200x49xf32, #tpu.memory_space<vmem>>, vector<1x200x49xf32>,
    return
  }
  func.func @transform_0(%arg0: i32) -> (i32, i32, i32) {
    %c0_i32 = arith.constant 0 : i32
    %c0_i32_0 = arith.constant 0 : i32
    %c0_i32_1 = arith.constant 0 : i32
    %c0_i32_2 = arith.constant 0 : i32
    return %c0_i32, %c0_i32_0, %c0_i32_1 : i32, i32, i32
  }
  func.func @transform_1(%arg0: i32) -> (i32, i32) {
    %c0_i32 = arith.constant 0 : i32
    %c0_i32_0 = arith.constant 0 : i32
    return %arg0, %c0_i32 : i32, i32
  }
  func.func @transform_2(%arg0: i32) -> (i32, i32) {
    %c0_i32 = arith.constant 0 : i32
    %c0_i32_0 = arith.constant 0 : i32
    return %arg0, %c0_i32 : i32, i32
  }
  func.func @transform_3(%arg0: i32) -> (i32, i32, i32) {
    %c0_i32 = arith.constant 0 : i32
    %c0_i32_0 = arith.constant 0 : i32
    %c0_i32_1 = arith.constant 0 : i32
    return %c0_i32, %arg0, %c0_i32_0 : i32, i32, i32
  }
  func.func @transform_4(%arg0: i32) -> (i32, i32, i32) {
    %c0_i32 = arith.constant 0 : i32
    %c0_i32_0 = arith.constant 0 : i32
    %c0_i32_1 = arith.constant 0 : i32
    return %c0_i32, %arg0, %c0_i32_0 : i32, i32, i32
  }
}

</mosaic_0001>

<bundles_post_ra>
// kernel: conv_bn_add.1
= control target key start
LH: loop header
LB: loop body
LE: loop exit
PB: predicated region body
PF: predicated region fallthrough
CT: control target
= control target key end

     0   :  { %s2202_s15 = smov 0   ;;  %s3108_s0 = inlined_call_operand.vmem [shape: f32[1,400,49], index: 0, kind: input, shape index: {}]   ;;  %s3109_s1 = inlined_call_operand.vmem [shape: f32[400,400], index: 1, kind: input, shape index: {}]   ;;  %s3110_s2 = inlined_call_operand.vmem [shape: f32[400,2], index: 2, kind: input, shape index: {}]   ;;  %s3111_s3 = inlined_call_operand.vmem [shape: f32[1,400,49], index: 3, kind: input, shape index: {}, may-alias: {3,4}]   ;;  %s3112_s4 = inlined_call_operand.vmem [shape: f32[1,400,49], index: 4, kind: output, shape index: {}, may-alias: {3,4}]  }
   0x1 LB: > { %s1961_s16 = sadd.s32 4294967295, %s2171_s15   ;;  %p1965_p0 = scmp.ge.s32.totalorder %s2171_s15, 1  ;;  %s2171_s15 = sphi %s2202_s15, %s14_s15  }
   0x2   : > { %p186_p1 = scmp.lt.s32.totalorder %s2171_s15, 3 }
   0x4   : > { %p187_p2 = pnand %p1965_p0, %p186_p1 }
   0x5   : > { %v348_v0 = vld [vmem:[%s3108_s0] sm:$0xff] (!%p187_p2)  ;;  %v349_v1 = vld [vmem:[%s3108_s0 + $0x8] sm:$0xff] (!%p187_p2)  ;;  %v350_v2 = vld [vmem:[%s3108_s0 + $0x10] sm:$0xff] (!%p187_p2)  ;;  %s223_s23 = smul.u32 (!%p187_p2), 25, %s1961_s16  ;;  %v2173_v3 = vmov (!%p187_p2), 0.0|0.0   ;;  %vm398_vm0 = vcmask (!%p187_p2), 130048  }
   0x6   : > { %190 = sbr.rel (%p187_p2) target bundleno = 808 (0x328), region = 36  ;;  %1999 = vmatprep.subr.bf16.mxu1 (!%p187_p2), %v2173_v3  ;;  %v2000_v4 = vpack.c.bf16 (!%p187_p2), %v349_v1, %v348_v0  ;;  %v351_v5 = vld [vmem:[%s3108_s0 + $0x18] sm:$0xff] (!%p187_p2)  ;;  %2047 = vmatprep.subr.bf16.mxu0 (!%p187_p2), %v2173_v3  ;;  %v352_v7 = vld [vmem:[%s3108_s0 + $0x20] sm:$0xff] (!%p187_p2)  ;;  %v353_v8 = vld [vmem:[%s3108_s0 + $0x28] sm:$0xff] (!%p187_p2)  ;;  %vm854_vm1 = vcmask (!%p187_p2), 400384  }
   0x7   : > { %p224_p3 = scmp.lt.s32.totalorder (!%p187_p2), %s223_s23, 49  ;;  %v2003_v6 = vpack.c.bf16 (!%p187_p2), %v351_v5, %v350_v2  ;;  %v380_v9 = vld [vmem:[%s3108_s0 + $0x100] sm:$0xff] (!%p187_p2)  ;;  %v381_v10 = vld [vmem:[%s3108_s0 + $0x108] sm:$0xff] (!%p187_p2)  ;;  %v382_v12 = vld [vmem:[%s3108_s0 + $0x110] sm:$0xff] (!%p187_p2)  ;;  %v2006_v14 = vpack.c.bf16 (!%p187_p2), %v353_v8, %v352_v7 }
   0x8   : > { %2001 = vmatpush1.bf16.msra.mxu1 (!%p187_p2), %v2000_v4  ;;  %v2048_v11 = vpack.c.bf16 (!%p187_p2), %v381_v10, %v380_v9  ;;  %v383_v13 = vld [vmem:[%s3108_s0 + $0x118] sm:$0xff] (!%p187_p2)  ;;  %v354_v15 = vld [vmem:[%s3108_s0 + $0x30] sm:$0xff] (!%p187_p2)  ;;  %v384_v18 = vld [vmem:[%s3108_s0 + $0x120] sm:$0xff] (!%p187_p2) }
   0x9   : > { %2002 = vmatprep.subr.bf16.mxu1 (!%p187_p2), %v2173_v3  ;;  %v355_v16 = vld [vmem:[%s3108_s0 + $0x38] sm:$0xff] (!%p187_p2)  ;;  %v2051_v17 = vpack.c.bf16 (!%p187_p2), %v383_v13, %v382_v12  ;;  %v385_v19 = vld [vmem:[%s3108_s0 + $0x128] sm:$0xff] (!%p187_p2)  ;;  %v356_v21 = vld [vmem:[%s3108_s0 + $0x40] sm:$0xff] (!%p187_p2) }
   0xa   : > { %2049 = vmatpush1.bf16.msra.mxu0 (!%p187_p2), %v2048_v11  ;;  %v2009_v20 = vpack.c.bf16 (!%p187_p2), %v355_v16, %v354_v15  ;;  %v357_v22 = vld [vmem:[%s3108_s0 + $0x48] sm:$0xff] (!%p187_p2)  ;;  %v2054_v23 = vpack.c.bf16 (!%p187_p2), %v385_v19, %v384_v18  ;;  %v386_v24 = vld [vmem:[%s3108_s0 + $0x130] sm:$0xff] (!%p187_p2)  ;;  %v387_v25 = vld [vmem:[%s3108_s0 + $0x138] sm:$0xff] (!%p187_p2) }
   0xb   : > { %2050 = vmatprep.subr.bf16.mxu0 (!%p187_p2), %v2173_v3  ;;  %v2012_v26 = vpack.c.bf16 (!%p187_p2), %v357_v22, %v356_v21  ;;  %v358_v27 = vld [vmem:[%s3108_s0 + $0x50] sm:$0xff] (!%p187_p2)  ;;  %v359_v28 = vld [vmem:[%s3108_s0 + $0x58] sm:$0xff] (!%p187_p2)  ;;  %v2057_v29 = vpack.c.bf16 (!%p187_p2), %v387_v25, %v386_v24  ;;  %v388_v31 = vld [vmem:[%s3108_s0 + $0x140] sm:$0xff] (!%p187_p2) }
   0xc   : > { %2004 = vmatpush1.bf16.msra.mxu1 (!%p187_p2), %v2003_v6  ;;  %v389_v32 = vld [vmem:[%s3108_s0 + $0x148] sm:$0xff] (!%p187_p2)  ;;  %v2015_v34 = vpack.c.bf16 (!%p187_p2), %v359_v28, %v358_v27  ;;  %v360_v35 = vld [vmem:[%s3108_s0 + $0x60] sm:$0xff] (!%p187_p2)  ;;  %v390_v38 = vld [vmem:[%s3108_s0 + $0x150] sm:$0xff] (!%p187_p2) }
   0xd   : > { %s3114_s23 = smov (!%p224_p3, %s223_s23), 49  ;;  %2005 = vmatprep.subr.bf16.mxu1 %v2173_v3  ;;  %v361_v36 = vld [vmem:[%s3108_s0 + $0x68] sm:$0xff]  ;;  %v2060_v37 = vpack.c.bf16 %v389_v32, %v388_v31  ;;  %v391_v39 = vld [vmem:[%s3108_s0 + $0x158] sm:$0xff]  ;;  %v362_v41 = vld [vmem:[%s3108_s0 + $0x70] sm:$0xff] }
   0xe   : > { %s1998_s21 = sshll.u32 %s3114_s23, 5  ;;  %2052 = vmatpush1.bf16.msra.mxu0 %v2051_v17  ;;  %v2018_v40 = vpack.c.bf16 %v361_v36, %v360_v35  ;;  %v363_v42 = vld [vmem:[%s3108_s0 + $0x78] sm:$0xff]  ;;  %v2063_v43 = vpack.c.bf16 %v391_v39, %v390_v38  ;;  %v392_v44 = vld [vmem:[%s3108_s0 + $0x160] sm:$0xff]  ;;  %v393_v45 = vld [vmem:[%s3108_s0 + $0x168] sm:$0xff] }
   0xf   : > { %2053 = vmatprep.subr.bf16.mxu0 %v2173_v3  ;;  %s2277_s7 = scalar_lea.vmem %s3109_s1, %s1998_s21  ;;  %v2021_v46 = vpack.c.bf16 %v363_v42, %v362_v41  ;;  %v364_v47 = vld [vmem:[%s3108_s0 + $0x80] sm:$0xff]  ;;  %v365_v48 = vld [vmem:[%s3108_s0 + $0x88] sm:$0xff]  ;;  %v2066_v49 = vpack.c.bf16 %v393_v45, %v392_v44  ;;  %v394_v50 = vld [vmem:[%s3108_s0 + $0x170] sm:$0xff] }
  0x10   : > { %2007 = vmatpush1.bf16.msra.mxu1 %v2006_v14  ;;  %v251_v30 = vld [vmem:[%s2277_s7 + $0x18] sm:$0xff]  ;;  %v249_v33 = vld [vmem:[%s2277_s7 + $0x8] sm:$0xff]  ;;  %v2024_v52 = vpack.c.bf16 %v365_v48, %v364_v47  ;;  %v366_v53 = vld [vmem:[%s3108_s0 + $0x90] sm:$0xff] }
  0x11   : > { %2008 = vmatprep.subr.bf16.mxu1 %v2173_v3  ;;  %1971 = vmatprep.mubr.msk.f32.mxu0 %vm398_vm0, %v251_v30  ;;  %v395_v51 = vld [vmem:[%s3108_s0 + $0x178] sm:$0xff]  ;;  %v396_v56 = vld [vmem:[%s3108_s0 + $0x180] sm:$0xff]  ;;  %v397_v57 = vld [vmem:[%s3108_s0 + $0x188] sm:$0xff] }
  0x12   : > { %2055 = vmatpush1.bf16.msra.mxu0 %v2054_v23  ;;  %538 = vmatprep.mubr.f32.mxu1 %v249_v33  ;;  %v367_v54 = vld [vmem:[%s3108_s0 + $0x98] sm:$0xff]  ;;  %v2069_v55 = vpack.c.bf16 %v395_v51, %v394_v50  ;;  %v368_v59 = vld [vmem:[%s3108_s0 + $0xa0] sm:$0xff]  ;;  %v369_v60 = vld [vmem:[%s3108_s0 + $0xa8] sm:$0xff]  ;;  %v2072_v61 = vpack.c.bf16 %v397_v57, %v396_v56 }
  0x13   : > { %2056 = vmatprep.subr.bf16.mxu0 %v2173_v3  ;;  %v2027_v58 = vpack.c.bf16 %v367_v54, %v366_v53  ;;  %v2030_v62 = vpack.c.bf16 %v369_v60, %v368_v59  ;;  %v370_v63 = vld [vmem:[%s3108_s0 + $0xb0] sm:$0xff]  ;;  %v371_v0 = vld [vmem:[%s3108_s0 + $0xb8] sm:$0xff]  ;;  %v372_v5 = vld [vmem:[%s3108_s0 + $0xc0] sm:$0xff] }
  0x14   : > { %2010 = vmatpush1.bf16.msra.mxu1 %v2009_v20  ;;  %v250_v1 = vld [vmem:[%s2277_s7 + $0x10] sm:$0xff]  ;;  %v255_v2 = vld [vmem:[%s2277_s7 + $0x38] sm:$0xff]  ;;  %v2033_v4 = vpack.c.bf16 %v371_v0, %v370_v63  ;;  %v373_v6 = vld [vmem:[%s3108_s0 + $0xc8] sm:$0xff] }
  0x15   : > { %2011 = vmatprep.subr.bf16.mxu1 %v2173_v3  ;;  %v254_v7 = vld [vmem:[%s2277_s7 + $0x30] sm:$0xff]  ;;  %v259_v8 = vld [vmem:[%s2277_s7 + $0x58] sm:$0xff]  ;;  %v2036_v9 = vpack.c.bf16 %v373_v6, %v372_v5  ;;  %v376_v15 = vld [vmem:[%s3108_s0 + $0xe0] sm:$0xff] }
  0x16   : > { %2058 = vmatpush1.bf16.msra.mxu0 %v2057_v29  ;;  %v374_v10 = vld [vmem:[%s3108_s0 + $0xd0] sm:$0xff]  ;;  %v375_v11 = vld [vmem:[%s3108_s0 + $0xd8] sm:$0xff]  ;;  %v377_v16 = vld [vmem:[%s3108_s0 + $0xe8] sm:$0xff] }
  0x17   : > { %2059 = vmatprep.subr.bf16.mxu0 %v2173_v3  ;;  %v258_v12 = vld [vmem:[%s2277_s7 + $0x50] sm:$0xff]  ;;  %v263_v13 = vld [vmem:[%s2277_s7 + $0x78] sm:$0xff]  ;;  %v2039_v14 = vpack.c.bf16 %v375_v11, %v374_v10  ;;  %v2042_v19 = vpack.c.bf16 %v377_v16, %v376_v15  ;;  %v248_v27 = vld [vmem:[%s2277_s7] sm:$0xff] }
  0x18   : > { %2013 = vmatpush1.bf16.msra.mxu1 %v2012_v26  ;;  %v262_v17 = vld [vmem:[%s2277_s7 + $0x70] sm:$0xff]  ;;  %v267_v18 = vld [vmem:[%s2277_s7 + $0x98] sm:$0xff]  ;;  %v253_v28 = vld [vmem:[%s2277_s7 + $0x28] sm:$0xff] }
  0x19   : > { %2014 = vmatprep.subr.bf16.mxu1 %v2173_v3  ;;  %v378_v20 = vld [vmem:[%s3108_s0 + $0xf0] sm:$0xff]  ;;  %v379_v21 = vld [vmem:[%s3108_s0 + $0xf8] sm:$0xff]  ;;  %v257_v31 = vld [vmem:[%s2277_s7 + $0x48] sm:$0xff] }
  0x1a   : > { %2061 = vmatpush1.bf16.msra.mxu0 %v2060_v37  ;;  %v266_v22 = vld [vmem:[%s2277_s7 + $0x90] sm:$0xff]  ;;  %v271_v23 = vld [vmem:[%s2277_s7 + $0xb8] sm:$0xff]  ;;  %v2045_v24 = vpack.c.bf16 %v379_v21, %v378_v20  ;;  %v261_v35 = vld [vmem:[%s2277_s7 + $0x68] sm:$0xff] }
  0x1b   : > { %2062 = vmatprep.subr.bf16.mxu0 %v2173_v3  ;;  %v270_v25 = vld [vmem:[%s2277_s7 + $0xb0] sm:$0xff]  ;;  %v275_v26 = vld [vmem:[%s2277_s7 + $0xd8] sm:$0xff]  ;;  %v260_v38 = vld [vmem:[%s2277_s7 + $0x60] sm:$0xff] }
  0x1c   : > { %2016 = vmatpush1.bf16.msra.mxu1 %v2015_v34  ;;  %v274_v29 = vld [vmem:[%s2277_s7 + $0xd0] sm:$0xff]  ;;  %v279_v30 = vld [vmem:[%s2277_s7 + $0xf8] sm:$0xff]  ;;  %v256_v34 = vld [vmem:[%s2277_s7 + $0x40] sm:$0xff] }
  0x1d   : > { %2017 = vmatprep.subr.bf16.mxu1 %v2173_v3  ;;  %v278_v32 = vld [vmem:[%s2277_s7 + $0xf0] sm:$0xff]  ;;  %v283_v33 = vld [vmem:[%s2277_s7 + $0x118] sm:$0xff]  ;;  %v265_v39 = vld [vmem:[%s2277_s7 + $0x88] sm:$0xff] }
  0x1e   : > { %2064 = vmatpush1.bf16.msra.mxu0 %v2063_v43  ;;  %v282_v36 = vld [vmem:[%s2277_s7 + $0x110] sm:$0xff]  ;;  %v287_v37 = vld [vmem:[%s2277_s7 + $0x138] sm:$0xff]  ;;  %v264_v42 = vld [vmem:[%s2277_s7 + $0x80] sm:$0xff] }
  0x1f   : > { %2065 = vmatprep.subr.bf16.mxu0 %v2173_v3  ;;  %v291_v41 = vld [vmem:[%s2277_s7 + $0x158] sm:$0xff]  ;;  %v269_v43 = vld [vmem:[%s2277_s7 + $0xa8] sm:$0xff]  ;;  %v290_v44 = vld [vmem:[%s2277_s7 + $0x150] sm:$0xff] }
  0x20   : > { %2019 = vmatpush1.bf16.msra.mxu1 %v2018_v40  ;;  %v286_v40 = vld [vmem:[%s2277_s7 + $0x130] sm:$0xff]  ;;  %v295_v45 = vld [vmem:[%s2277_s7 + $0x178] sm:$0xff]  ;;  %v273_v47 = vld [vmem:[%s2277_s7 + $0xc8] sm:$0xff] }
  0x21   : > { %2020 = vmatprep.subr.bf16.mxu1 %v2173_v3  ;;  %v294_v48 = vld [vmem:[%s2277_s7 + $0x170] sm:$0xff]  ;;  %v272_v50 = vld [vmem:[%s2277_s7 + $0xc0] sm:$0xff]  ;;  %v277_v51 = vld [vmem:[%s2277_s7 + $0xe8] sm:$0xff] }
  0x22   : > { %2067 = vmatpush1.bf16.msra.mxu0 %v2066_v49  ;;  %v299_v49 = vld [vmem:[%s2277_s7 + $0x198] sm:$0xff]  ;;  %v276_v54 = vld [vmem:[%s2277_s7 + $0xe0] sm:$0xff]  ;;  %v302_v56 = vld [vmem:[%s2277_s7 + $0x1b0] sm:$0xff] }
  0x23   : > { %2068 = vmatprep.subr.bf16.mxu0 %v2173_v3  ;;  %v303_v53 = vld [vmem:[%s2277_s7 + $0x1b8] sm:$0xff]  ;;  %v285_v59 = vld [vmem:[%s2277_s7 + $0x128] sm:$0xff]  ;;  %v306_v60 = vld [vmem:[%s2277_s7 + $0x1d0] sm:$0xff] }
  0x24   : > { %2022 = vmatpush1.bf16.msra.mxu1 %v2021_v46  ;;  %v268_v46 = vld [vmem:[%s2277_s7 + $0xa0] sm:$0xff]  ;;  %v307_v57 = vld [vmem:[%s2277_s7 + $0x1d8] sm:$0xff]  ;;  %v289_v63 = vld [vmem:[%s2277_s7 + $0x148] sm:$0xff] }
  0x25   : > { %2023 = vmatprep.subr.bf16.mxu1 %v2173_v3  ;;  %v310_v0 = vld [vmem:[%s2277_s7 + $0x1f0] sm:$0xff]  ;;  %v319_v6 = vld [vmem:[%s2277_s7 + $0x238] sm:$0xff]  ;;  %v296_v11 = vld [vmem:[%s2277_s7 + $0x180] sm:$0xff] }
  0x26   : > { %2070 = vmatpush1.bf16.msra.mxu0 %v2069_v55  ;;  %v281_v55 = vld [vmem:[%s2277_s7 + $0x108] sm:$0xff]  ;;  %v314_v5 = vld [vmem:[%s2277_s7 + $0x210] sm:$0xff]  ;;  %v323_v10 = vld [vmem:[%s2277_s7 + $0x258] sm:$0xff] }
  0x27   : > { %2071 = vmatprep.subr.bf16.mxu0 %v2173_v3  ;;  %v300_v15 = vld [vmem:[%s2277_s7 + $0x1a0] sm:$0xff]  ;;  %v305_v16 = vld [vmem:[%s2277_s7 + $0x1c8] sm:$0xff]  ;;  %v330_v21 = vld [vmem:[%s2277_s7 + $0x290] sm:$0xff] }
  0x28   : > { %2025 = vmatpush1.bf16.msra.mxu1 %v2024_v52  ;;  %v298_v52 = vld [vmem:[%s2277_s7 + $0x190] sm:$0xff]  ;;  %v309_v20 = vld [vmem:[%s2277_s7 + $0x1e8] sm:$0xff] }
  0x29   : > { %2026 = vmatprep.subr.bf16.mxu1 %v2173_v3 }
  0x2a   : > { %2073 = vmatpush1.bf16.msra.mxu0 %v2072_v61  ;;  %v311_v61 = vld [vmem:[%s2277_s7 + $0x1f8] sm:$0xff] }
  0x2c   : > { %2028 = vmatpush1.bf16.msra.mxu1 %v2027_v58  ;;  %v280_v58 = vld [vmem:[%s2277_s7 + $0x100] sm:$0xff] }
  0x2d   : > { %2029 = vmatprep.subr.bf16.mxu1 %v2173_v3  ;;  %729 = vmatmul.mubr.f32.vlgmr.msra.gmra.mrb[0].mxu0 %v250_v1  ;;  %v315_v1 = vld [vmem:[%s2277_s7 + $0x218] sm:$0xff] }
  0x2e   : > { %1972 = vmatprep.mubr.msk.f32.mxu0 %vm398_vm0, %v255_v2  ;;  %v288_v2 = vld [vmem:[%s2277_s7 + $0x140] sm:$0xff] }
  0x30   : > { %2031 = vmatpush1.bf16.msra.mxu1 %v2030_v62  ;;  %v284_v62 = vld [vmem:[%s2277_s7 + $0x120] sm:$0xff] }
  0x31   : > { %2032 = vmatprep.subr.bf16.mxu1 %v2173_v3  ;;  %734 = vmatmul.mubr.f32.gmra.mrb[2].mxu0 %v254_v7  ;;  %v292_v7 = vld [vmem:[%s2277_s7 + $0x160] sm:$0xff] }
  0x32   : > { %1973 = vmatprep.mubr.msk.f32.mxu0 %vm398_vm0, %v259_v8  ;;  %v297_v8 = vld [vmem:[%s2277_s7 + $0x188] sm:$0xff] }
  0x34   : > { %2034 = vmatpush1.bf16.msra.mxu1 %v2033_v4  ;;  %v293_v4 = vld [vmem:[%s2277_s7 + $0x168] sm:$0xff] }
  0x35   : > { %2035 = vmatprep.subr.bf16.mxu1 %v2173_v3  ;;  %739 = vmatmul.mubr.f32.gmra.mrb[4].mxu0 %v258_v12  ;;  %v301_v12 = vld [vmem:[%s2277_s7 + $0x1a8] sm:$0xff] }
  0x36   : > { %1974 = vmatprep.mubr.msk.f32.mxu0 %vm398_vm0, %v263_v13  ;;  %v322_v13 = vld [vmem:[%s2277_s7 + $0x250] sm:$0xff] }
  0x38   : > { %2037 = vmatpush1.bf16.msra.mxu1 %v2036_v9  ;;  %v318_v9 = vld [vmem:[%s2277_s7 + $0x230] sm:$0xff] }
  0x39   : > { %2038 = vmatprep.subr.bf16.mxu1 %v2173_v3  ;;  %744 = vmatmul.mubr.f32.gmra.mrb[6].mxu0 %v262_v17  ;;  %v326_v17 = vld [vmem:[%s2277_s7 + $0x270] sm:$0xff] }
  0x3a   : > { %1975 = vmatprep.mubr.msk.f32.mxu0 %vm398_vm0, %v267_v18  ;;  %v331_v18 = vld [vmem:[%s2277_s7 + $0x298] sm:$0xff] }
  0x3c   : > { %2040 = vmatpush1.bf16.msra.mxu1 %v2039_v14  ;;  %v327_v14 = vld [vmem:[%s2277_s7 + $0x278] sm:$0xff] }
  0x3d   : > { %2041 = vmatprep.subr.bf16.mxu1 %v2173_v3  ;;  %749 = vmatmul.mubr.f32.gmra.mrb[8].mxu0 %v266_v22  ;;  %v335_v22 = vld [vmem:[%s2277_s7 + $0x2b8] sm:$0xff] }
  0x3e   : > { %1976 = vmatprep.mubr.msk.f32.mxu0 %vm398_vm0, %v271_v23  ;;  %v308_v23 = vld [vmem:[%s2277_s7 + $0x1e0] sm:$0xff] }
  0x40   : > { %2043 = vmatpush1.bf16.msra.mxu1 %v2042_v19  ;;  %v304_v19 = vld [vmem:[%s2277_s7 + $0x1c0] sm:$0xff] }
  0x41   : > { %2044 = vmatprep.subr.bf16.mxu1 %v2173_v3  ;;  %754 = vmatmul.mubr.f32.gmra.mrb[10].mxu0 %v270_v25  ;;  %v252_v3 = vld [vmem:[%s2277_s7 + $0x20] sm:$0xff]  ;;  %v334_v25 = vld [vmem:[%s2277_s7 + $0x2b0] sm:$0xff] }
  0x42   : > { %1977 = vmatprep.mubr.msk.f32.mxu0 %vm398_vm0, %v275_v26  ;;  %v339_v26 = vld [vmem:[%s2277_s7 + $0x2d8] sm:$0xff] }
  0x44   : > { %2046 = vmatpush1.bf16.msra.mxu1 %v2045_v24  ;;  %v313_v24 = vld [vmem:[%s2277_s7 + $0x208] sm:$0xff] }
  0x45   : > { %759 = vmatmul.mubr.f32.gmra.mrb[12].mxu0 %v274_v29  ;;  %v338_v29 = vld [vmem:[%s2277_s7 + $0x2d0] sm:$0xff] }
  0x46   : > { %1978 = vmatprep.mubr.msk.f32.mxu0 %vm398_vm0, %v279_v30  ;;  %v343_v30 = vld [vmem:[%s2277_s7 + $0x2f8] sm:$0xff] }
  0x47   : > { %539 = vmatmul.mubr.f32.vlgmr.msra.gmra.mrb[0].mxu1 %v248_v27  ;;  %v312_v27 = vld [vmem:[%s2277_s7 + $0x200] sm:$0xff] }
  0x48   : > { %543 = vmatprep.mubr.f32.mxu1 %v253_v28  ;;  %v317_v28 = vld [vmem:[%s2277_s7 + $0x228] sm:$0xff] }
  0x49   : > { %764 = vmatmul.mubr.f32.gmra.mrb[14].mxu0 %v278_v32  ;;  %v342_v32 = vld [vmem:[%s2277_s7 + $0x2f0] sm:$0xff] }
  0x4a   : > { %1979 = vmatprep.mubr.msk.f32.mxu0 %vm398_vm0, %v283_v33  ;;  %v347_v33 = vld [vmem:[%s2277_s7 + $0x318] sm:$0xff] }
  0x4b   : > { %544 = vmatmul.mubr.f32.gmra.mrb[2].mxu1 %v252_v3  ;;  %v316_v3 = vld [vmem:[%s2277_s7 + $0x220] sm:$0xff] }
  0x4c   : > { %548 = vmatprep.mubr.f32.mxu1 %v257_v31  ;;  %v321_v31 = vld [vmem:[%s2277_s7 + $0x248] sm:$0xff] }
  0x4d   : > { %769 = vmatmul.mubr.f32.gmra.mrb[16].mxu0 %v282_v36  ;;  %v346_v36 = vld [vmem:[%s2277_s7 + $0x310] sm:$0xff] }
  0x4e   : > { %1980 = vmatprep.mubr.msk.f32.mxu0 %vm398_vm0, %v287_v37  ;;  %v324_v37 = vld [vmem:[%s2277_s7 + $0x260] sm:$0xff] }
  0x4f   : > { %549 = vmatmul.mubr.f32.gmra.mrb[4].mxu1 %v256_v34  ;;  %v320_v34 = vld [vmem:[%s2277_s7 + $0x240] sm:$0xff] }
  0x50   : > { %553 = vmatprep.mubr.f32.mxu1 %v261_v35  ;;  %v325_v35 = vld [vmem:[%s2277_s7 + $0x268] sm:$0xff] }
  0x51   : > { %774 = vmatmul.mubr.f32.gmra.mrb[18].mxu0 %v286_v40  ;;  %v333_v40 = vld [vmem:[%s2277_s7 + $0x2a8] sm:$0xff] }
  0x52   : > { %1981 = vmatprep.mubr.msk.f32.mxu0 %vm398_vm0, %v291_v41  ;;  %v332_v41 = vld [vmem:[%s2277_s7 + $0x2a0] sm:$0xff] }
  0x53   : > { %554 = vmatmul.mubr.f32.gmra.mrb[6].mxu1 %v260_v38  ;;  %v329_v38 = vld [vmem:[%s2277_s7 + $0x288] sm:$0xff] }
  0x54   : > { %558 = vmatprep.mubr.f32.mxu1 %v265_v39  ;;  %v328_v39 = vld [vmem:[%s2277_s7 + $0x280] sm:$0xff] }
  0x55   : > { %779 = vmatmul.mubr.f32.gmra.mrb[20].mxu0 %v290_v44  ;;  %v341_v44 = vld [vmem:[%s2277_s7 + $0x2e8] sm:$0xff] }
  0x56   : > { %1982 = vmatprep.mubr.msk.f32.mxu0 %vm398_vm0, %v295_v45  ;;  %v340_v45 = vld [vmem:[%s2277_s7 + $0x2e0] sm:$0xff] }
  0x57   : > { %559 = vmatmul.mubr.f32.gmra.mrb[8].mxu1 %v264_v42  ;;  %v337_v42 = vld [vmem:[%s2277_s7 + $0x2c8] sm:$0xff] }
  0x58   : > { %563 = vmatprep.mubr.f32.mxu1 %v269_v43  ;;  %v336_v43 = vld [vmem:[%s2277_s7 + $0x2c0] sm:$0xff] }
  0x59   : > { %784 = vmatmul.mubr.f32.gmra.mrb[22].mxu0 %v294_v48 }
  0x5a   : > { %1983 = vmatprep.mubr.msk.f32.mxu0 %vm398_vm0, %v299_v49 }
  0x5b   : > { %564 = vmatmul.mubr.f32.gmra.mrb[10].mxu1 %v268_v46  ;;  %v345_v46 = vld [vmem:[%s2277_s7 + $0x308] sm:$0xff] }
  0x5c   : > { %568 = vmatprep.mubr.f32.mxu1 %v273_v47  ;;  %v344_v47 = vld [vmem:[%s2277_s7 + $0x300] sm:$0xff]  ;;  %s2632_s7 = sshll.u32 %s3114_s23, 3  ;;  %s2175_s23 = smov 1  }
  0x5d   : > { %789 = vmatmul.mubr.f32.gmra.mrb[24].mxu0 %v298_v52  ;;  %s2638_s30 = scalar_lea.vmem %s3110_s2, %s2632_s7  ;;  %s2940_s8 = scalar_lea.vmem %s3111_s3, %s2632_s7 }
  0x5e   : > { %1984 = vmatprep.mubr.msk.f32.mxu0 %vm398_vm0, %v303_v53  ;;  %s2950_s11 = scalar_lea.vmem %s3112_s4, %s2632_s7 }
  0x5f   : > { %569 = vmatmul.mubr.f32.gmra.mrb[12].mxu1 %v272_v50 }
  0x60   : > { %573 = vmatprep.mubr.f32.mxu1 %v277_v51 }
  0x61   : > { %794 = vmatmul.mubr.f32.gmra.mrb[26].mxu0 %v302_v56 }
  0x62   : > { %1985 = vmatprep.mubr.msk.f32.mxu0 %vm398_vm0, %v307_v57 }
  0x63   : > { %574 = vmatmul.mubr.f32.gmra.mrb[14].mxu1 %v276_v54 }
  0x64   : > { %578 = vmatprep.mubr.f32.mxu1 %v281_v55 }
  0x65   : > { %799 = vmatmul.mubr.f32.gmra.mrb[28].mxu0 %v306_v60 }
  0x66   : > { %1986 = vmatprep.mubr.msk.f32.mxu0 %vm398_vm0, %v311_v61 }
  0x67   : > { %579 = vmatmul.mubr.f32.gmra.mrb[16].mxu1 %v280_v58 }
  0x68   : > { %583 = vmatprep.mubr.f32.mxu1 %v285_v59 }
  0x69   : > { %804 = vmatmul.mubr.f32.gmra.mrb[30].mxu0 %v310_v0 }
  0x6a   : > { %1987 = vmatprep.mubr.msk.f32.mxu0 %vm398_vm0, %v315_v1 }
  0x6b   : > { %584 = vmatmul.mubr.f32.gmra.mrb[18].mxu1 %v284_v62 }
  0x6c   : > { %588 = vmatprep.mubr.f32.mxu1 %v289_v63 }
  0x6d   : > { %809 = vmatmul.mubr.f32.gmra.mrb[32].mxu0 %v314_v5 }
  0x6e   : > { %1988 = vmatprep.mubr.msk.f32.mxu0 %vm398_vm0, %v319_v6 }
  0x6f   : > { %589 = vmatmul.mubr.f32.gmra.mrb[20].mxu1 %v288_v2 }
  0x70   : > { %593 = vmatprep.mubr.f32.mxu1 %v293_v4 }
  0x71   : > { %814 = vmatmul.mubr.f32.gmra.mrb[34].mxu0 %v318_v9 }
  0x72   : > { %1989 = vmatprep.mubr.msk.f32.mxu0 %vm398_vm0, %v323_v10 }
  0x73   : > { %594 = vmatmul.mubr.f32.gmra.mrb[22].mxu1 %v292_v7 }
  0x74   : > { %598 = vmatprep.mubr.f32.mxu1 %v297_v8 }
  0x75   : > { %819 = vmatmul.mubr.f32.gmra.mrb[36].mxu0 %v322_v13 }
  0x76   : > { %1990 = vmatprep.mubr.msk.f32.mxu0 %vm398_vm0, %v327_v14 }
  0x77   : > { %599 = vmatmul.mubr.f32.gmra.mrb[24].mxu1 %v296_v11 }
  0x78   : > { %603 = vmatprep.mubr.f32.mxu1 %v301_v12 }
  0x79   : > { %824 = vmatmul.mubr.f32.gmra.mrb[38].mxu0 %v326_v17 }
  0x7a   : > { %1991 = vmatprep.mubr.msk.f32.mxu0 %vm398_vm0, %v331_v18 }
  0x7b   : > { %604 = vmatmul.mubr.f32.gmra.mrb[26].mxu1 %v300_v15 }
  0x7c   : > { %608 = vmatprep.mubr.f32.mxu1 %v305_v16 }
  0x7d   : > { %829 = vmatmul.mubr.f32.gmra.mrb[40].mxu0 %v330_v21 }
  0x7e   : > { %1992 = vmatprep.mubr.msk.f32.mxu0 %vm398_vm0, %v335_v22 }
  0x7f   : > { %609 = vmatmul.mubr.f32.gmra.mrb[28].mxu1 %v304_v19 }
  0x80   : > { %613 = vmatprep.mubr.f32.mxu1 %v309_v20 }
  0x81   : > { %834 = vmatmul.mubr.f32.gmra.mrb[42].mxu0 %v334_v25 }
  0x82   : > { %1993 = vmatprep.mubr.msk.f32.mxu0 %vm398_vm0, %v339_v26 }
  0x83   : > { %614 = vmatmul.mubr.f32.gmra.mrb[30].mxu1 %v308_v23 }
  0x84   : > { %618 = vmatprep.mubr.f32.mxu1 %v313_v24 }
  0x85   : > { %839 = vmatmul.mubr.f32.gmra.mrb[44].mxu0 %v338_v29 }
  0x86   : > { %1994 = vmatprep.mubr.msk.f32.mxu0 %vm398_vm0, %v343_v30 }
  0x87   : > { %619 = vmatmul.mubr.f32.gmra.mrb[32].mxu1 %v312_v27 }
  0x88   : > { %623 = vmatprep.mubr.f32.mxu1 %v317_v28 }
  0x89   : > { %844 = vmatmul.mubr.f32.gmra.mrb[46].mxu0 %v342_v32 }
  0x8a   : > { %1995 = vmatprep.mubr.msk.f32.mxu0 %vm398_vm0, %v347_v33 }
  0x8b   : > { %624 = vmatmul.mubr.f32.gmra.mrb[34].mxu1 %v316_v3 }
  0x8c   : > { %628 = vmatprep.mubr.f32.mxu1 %v321_v31 }
  0x8d   : > { %849 = vmatmul.mubr.f32.gmra.mrb[48].mxu0 %v346_v36 }
  0x8f   : > { %629 = vmatmul.mubr.f32.gmra.mrb[36].mxu1 %v320_v34 }
  0x90   : > { %633 = vmatprep.mubr.f32.mxu1 %v325_v35 }
  0x93   : > { %634 = vmatmul.mubr.f32.gmra.mrb[38].mxu1 %v324_v37 }
  0x94   : > { %638 = vmatprep.mubr.f32.mxu1 %v329_v38 }
  0x97   : > { %639 = vmatmul.mubr.f32.gmra.mrb[40].mxu1 %v328_v39 }
  0x98   : > { %643 = vmatprep.mubr.f32.mxu1 %v333_v40 }
  0x9b   : > { %644 = vmatmul.mubr.f32.gmra.mrb[42].mxu1 %v332_v41 }
  0x9c   : > { %648 = vmatprep.mubr.f32.mxu1 %v337_v42 }
  0x9f   : > { %649 = vmatmul.mubr.f32.gmra.mrb[44].mxu1 %v336_v43 }
  0xa0   : > { %653 = vmatprep.mubr.f32.mxu1 %v341_v44 }
  0xa3   : > { %654 = vmatmul.mubr.f32.gmra.mrb[46].mxu1 %v340_v45 }
  0xa4   : > { %658 = vmatprep.mubr.f32.mxu1 %v345_v46 }
  0xa7   : > { %659 = vmatmul.mubr.f32.gmra.mrb[48].mxu1 %v344_v47 }
 0x100   : > { %v730_v48 = vpop.f32.mrb[0].mxu0 }
 0x101   : > { %v732_v49 = vpop.f32.mrb[1].mxu0 }
 0x104   : > { %v735_v50 = vpop.f32.mrb[2].mxu0 }
 0x105   : > { %v737_v51 = vpop.f32.mrb[3].mxu0 }
 0x108   : > { %v740_v52 = vpop.f32.mrb[4].mxu0 }
 0x109   : > { %v742_v53 = vpop.f32.mrb[5].mxu0 }
 0x10c   : > { %v745_v54 = vpop.f32.mrb[6].mxu0 }
 0x10d   : > { %v747_v55 = vpop.f32.mrb[7].mxu0 }
 0x110   : > { %v750_v56 = vpop.f32.mrb[8].mxu0 }
 0x111   : > { %v752_v57 = vpop.f32.mrb[9].mxu0 }
 0x114   : > { %v755_v58 = vpop.f32.mrb[10].mxu0 }
 0x115   : > { %v757_v59 = vpop.f32.mrb[11].mxu0 }
 0x118   : > { %v760_v63 = vpop.f32.mrb[12].mxu0 }
 0x119   : > { %v762_v0 = vpop.f32.mrb[13].mxu0 }
 0x11a   : > { %v540_v60 = vpop.f32.mrb[0].mxu1 }
 0x11b   : > { %v731_v61 = vadd.f32 %v730_v48, %v540_v60  ;;  %v542_v62 = vpop.f32.mrb[1].mxu1 }
 0x11c   : > { %v765_v8 = vpop.f32.mrb[14].mxu0 }
 0x11d   : > { %855 = vst.msk [vmem:[#allocation2] sm:$0xff] %vm854_vm1, %v731_v61  ;;  %v880_v1 = vsel %vm854_vm1, %v731_v61, 0.0  ;;  %v980_v2 = vmul.f32 %v731_v61, %v731_v61  ;;  %v767_v9 = vpop.f32.mrb[15].mxu0 }
 0x11e   : > { %881 = vadd.xlane.f32.xlu0 %v880_v1  ;;  %v545_v4 = vpop.f32.mrb[2].mxu1 }
 0x11f   : > { %v736_v5 = vadd.f32 %v735_v50, %v545_v4  ;;  %v547_v6 = vpop.f32.mrb[3].mxu1  ;;  %v1005_v7 = vsel %vm854_vm1, %v980_v2, 0.0 }
 0x120   : > { %1006 = vadd.xlane.f32.xlu1 %v1005_v7  ;;  %v770_v15 = vpop.f32.mrb[16].mxu0 }
 0x121   : > { %856 = vst.msk [vmem:[#allocation2 + $0x8] sm:$0xff] %vm854_vm1, %v736_v5  ;;  %v883_v10 = vsel %vm854_vm1, %v736_v5, 0.0  ;;  %v981_v11 = vmul.f32 %v736_v5, %v736_v5  ;;  %v772_v16 = vpop.f32.mrb[17].mxu0 }
 0x122   : > { %884 = vadd.xlane.f32.xlu0 %v883_v10  ;;  %v550_v12 = vpop.f32.mrb[4].mxu1 }
 0x123   : > { %v741_v13 = vadd.f32 %v740_v52, %v550_v12  ;;  %v552_v14 = vpop.f32.mrb[5].mxu1  ;;  %v1008_v17 = vsel %vm854_vm1, %v981_v11, 0.0  ;;  %v2174_v12 = vmov 0  }
 0x124   : > { %v775_v24 = vpop.f32.mrb[18].mxu0  ;;  %2112 = vset.pattern.permute.xlu0 %v2174_v12  ;;  %2111 = vset.pattern.permute.xlu1 %v2174_v12 }
 0x125   : > { %857 = vst.msk [vmem:[#allocation2 + $0x10] sm:$0xff] %vm854_vm1, %v741_v13  ;;  %v886_v18 = vsel %vm854_vm1, %v741_v13, 0.0  ;;  %v982_v19 = vmul.f32 %v741_v13, %v741_v13  ;;  %v777_v25 = vpop.f32.mrb[19].mxu0 }
 0x126   : > { %1009 = vadd.xlane.f32.xlu0 %v1008_v17  ;;  %887 = vadd.xlane.f32.xlu1 %v886_v18  ;;  %v555_v20 = vpop.f32.mrb[6].mxu1 }
 0x127   : > { %v746_v21 = vadd.f32 %v745_v54, %v555_v20  ;;  %v557_v22 = vpop.f32.mrb[7].mxu1  ;;  %v1011_v23 = vsel %vm854_vm1, %v982_v19, 0.0 }
 0x128   : > { %v2529_v3 = vpop.f32.mrb[20].mxu0 }
 0x129   : > { %858 = vst.msk [vmem:[#allocation2 + $0x18] sm:$0xff] %vm854_vm1, %v746_v21  ;;  %v983_v26 = vmul.f32 %v746_v21, %v746_v21  ;;  %v782_v31 = vpop.f32.mrb[21].mxu0  ;;  %v889_v32 = vsel %vm854_vm1, %v746_v21, 0.0 }
 0x12a   : > { %1012 = vadd.xlane.f32.xlu1 %v1011_v23  ;;  %v560_v27 = vpop.f32.mrb[8].mxu1 }
 0x12b   : > { %v751_v28 = vadd.f32 %v750_v56, %v560_v27  ;;  %v1014_v29 = vsel %vm854_vm1, %v983_v26, 0.0  ;;  %v562_v30 = vpop.f32.mrb[9].mxu1 }
 0x12c   : > { %1015 = vadd.xlane.f32.xlu0 %v1014_v29  ;;  %v2535_v39 = vpop.f32.mrb[22].mxu0 }
 0x12d   : > { %859 = vst.msk [vmem:[#allocation2 + $0x20] sm:$0xff] %vm854_vm1, %v751_v28  ;;  %v892_v33 = vsel %vm854_vm1, %v751_v28, 0.0  ;;  %v984_v34 = vmul.f32 %v751_v28, %v751_v28  ;;  %v787_v40 = vpop.f32.mrb[23].mxu0 }
 0x12e   : > { %890 = vadd.xlane.f32.xlu1 %v889_v32  ;;  %v565_v35 = vpop.f32.mrb[10].mxu1 }
 0x12f   : > { %v756_v36 = vadd.f32 %v755_v58, %v565_v35  ;;  %v567_v37 = vpop.f32.mrb[11].mxu1  ;;  %v1017_v38 = vsel %vm854_vm1, %v984_v34, 0.0 }
 0x130   : > { %893 = vadd.xlane.f32.xlu0 %v892_v33  ;;  %v2539_v46 = vpop.f32.mrb[24].mxu0 }
 0x131   : > { %860 = vst.msk [vmem:[#allocation2 + $0x28] sm:$0xff] %vm854_vm1, %v756_v36  ;;  %v985_v41 = vmul.f32 %v756_v36, %v756_v36  ;;  %v792_v47 = vpop.f32.mrb[25].mxu0  ;;  %v895_v48 = vsel %vm854_vm1, %v756_v36, 0.0 }
 0x132   : > { %1018 = vadd.xlane.f32.xlu1 %v1017_v38  ;;  %v570_v42 = vpop.f32.mrb[12].mxu1 }
 0x133   : > { %v761_v43 = vadd.f32 %v760_v63, %v570_v42  ;;  %v1020_v44 = vsel %vm854_vm1, %v985_v41, 0.0  ;;  %v572_v45 = vpop.f32.mrb[13].mxu1 }
 0x134   : > { %1021 = vadd.xlane.f32.xlu0 %v1020_v44  ;;  %v2545_v55 = vpop.f32.mrb[26].mxu0 }
 0x135   : > { %861 = vst.msk [vmem:[#allocation2 + $0x30] sm:$0xff] %vm854_vm1, %v761_v43  ;;  %v898_v49 = vsel %vm854_vm1, %v761_v43, 0.0  ;;  %v986_v50 = vmul.f32 %v761_v43, %v761_v43  ;;  %v797_v56 = vpop.f32.mrb[27].mxu0 }
 0x136   : > { %896 = vadd.xlane.f32.xlu1 %v895_v48  ;;  %v575_v51 = vpop.f32.mrb[14].mxu1 }
 0x137   : > { %v766_v52 = vadd.f32 %v765_v8, %v575_v51  ;;  %v577_v53 = vpop.f32.mrb[15].mxu1  ;;  %v1023_v54 = vsel %vm854_vm1, %v986_v50, 0.0 }
 0x138   : > { %899 = vadd.xlane.f32.xlu0 %v898_v49  ;;  %v2549_v62 = vpop.f32.mrb[28].mxu0 }
 0x139   : > { %862 = vst.msk [vmem:[#allocation2 + $0x38] sm:$0xff] %vm854_vm1, %v766_v52  ;;  %v987_v57 = vmul.f32 %v766_v52, %v766_v52  ;;  %v802_v63 = vpop.f32.mrb[29].mxu0  ;;  %v901_v0 = vsel %vm854_vm1, %v766_v52, 0.0 }
 0x13a   : > { %1024 = vadd.xlane.f32.xlu1 %v1023_v54  ;;  %v580_v58 = vpop.f32.mrb[16].mxu1 }
 0x13b   : > { %v771_v59 = vadd.f32 %v770_v15, %v580_v58  ;;  %v1026_v60 = vsel %vm854_vm1, %v987_v57, 0.0  ;;  %v582_v61 = vpop.f32.mrb[17].mxu1 }
 0x13c   : > { %1027 = vadd.xlane.f32.xlu0 %v1026_v60  ;;  %v2555_v8 = vpop.f32.mrb[30].mxu0 }
 0x13d   : > { %863 = vst.msk [vmem:[#allocation2 + $0x40] sm:$0xff] %vm854_vm1, %v771_v59  ;;  %v904_v1 = vsel %vm854_vm1, %v771_v59, 0.0  ;;  %v988_v2 = vmul.f32 %v771_v59, %v771_v59  ;;  %v807_v9 = vpop.f32.mrb[31].mxu0 }
 0x13e   : > { %902 = vadd.xlane.f32.xlu1 %v901_v0  ;;  %v585_v4 = vpop.f32.mrb[18].mxu1 }
 0x13f   : > { %v776_v5 = vadd.f32 %v775_v24, %v585_v4  ;;  %v587_v6 = vpop.f32.mrb[19].mxu1  ;;  %v1029_v7 = vsel %vm854_vm1, %v988_v2, 0.0 }
 0x140   : > { %905 = vadd.xlane.f32.xlu0 %v904_v1  ;;  %v2560_v16 = vpop.f32.mrb[32].mxu0 }
 0x141   : > { %864 = vst.msk [vmem:[#allocation2 + $0x48] sm:$0xff] %vm854_vm1, %v776_v5  ;;  %v989_v10 = vmul.f32 %v776_v5, %v776_v5  ;;  %v812_v17 = vpop.f32.mrb[33].mxu0  ;;  %v907_v18 = vsel %vm854_vm1, %v776_v5, 0.0 }
 0x142   : > { %1030 = vadd.xlane.f32.xlu1 %v1029_v7  ;;  %v590_v11 = vpop.f32.mrb[20].mxu1 }
 0x143   : > { %v781_v13 = vadd.f32 %v2529_v3, %v590_v11  ;;  %v1032_v14 = vsel %vm854_vm1, %v989_v10, 0.0  ;;  %v592_v15 = vpop.f32.mrb[21].mxu1 }
 0x144   : > { %1033 = vadd.xlane.f32.xlu0 %v1032_v14  ;;  %v2567_v25 = vpop.f32.mrb[34].mxu0 }
 0x145   : > { %865 = vst.msk [vmem:[#allocation2 + $0x50] sm:$0xff] %vm854_vm1, %v781_v13  ;;  %v910_v19 = vsel %vm854_vm1, %v781_v13, 0.0  ;;  %v990_v20 = vmul.f32 %v781_v13, %v781_v13  ;;  %v817_v26 = vpop.f32.mrb[35].mxu0 }
 0x146   : > { %908 = vadd.xlane.f32.xlu1 %v907_v18  ;;  %v595_v21 = vpop.f32.mrb[22].mxu1 }
 0x147   : > { %v786_v22 = vadd.f32 %v2535_v39, %v595_v21  ;;  %v597_v23 = vpop.f32.mrb[23].mxu1  ;;  %v1035_v24 = vsel %vm854_vm1, %v990_v20, 0.0 }
 0x148   : > { %911 = vadd.xlane.f32.xlu0 %v910_v19  ;;  %v2572_v31 = vpop.f32.mrb[36].mxu0 }
 0x149   : > { %866 = vst.msk [vmem:[#allocation2 + $0x58] sm:$0xff] %vm854_vm1, %v786_v22  ;;  %v991_v27 = vmul.f32 %v786_v22, %v786_v22  ;;  %v822_v32 = vpop.f32.mrb[37].mxu0  ;;  %v913_v33 = vsel %vm854_vm1, %v786_v22, 0.0 }
 0x14a   : > { %1036 = vadd.xlane.f32.xlu1 %v1035_v24  ;;  %v600_v28 = vpop.f32.mrb[24].mxu1 }
 0x14b   : > { %v791_v29 = vadd.f32 %v2539_v46, %v600_v28  ;;  %v1038_v30 = vsel %vm854_vm1, %v991_v27, 0.0  ;;  %v602_v3 = vpop.f32.mrb[25].mxu1 }
 0x14c   : > { %1039 = vadd.xlane.f32.xlu0 %v1038_v30  ;;  %v2579_v40 = vpop.f32.mrb[38].mxu0 }
 0x14d   : > { %867 = vst.msk [vmem:[#allocation2 + $0x60] sm:$0xff] %vm854_vm1, %v791_v29  ;;  %v916_v34 = vsel %vm854_vm1, %v791_v29, 0.0  ;;  %v992_v35 = vmul.f32 %v791_v29, %v791_v29  ;;  %v827_v41 = vpop.f32.mrb[39].mxu0 }
 0x14e   : > { %914 = vadd.xlane.f32.xlu1 %v913_v33  ;;  %v605_v36 = vpop.f32.mrb[26].mxu1 }
 0x14f   : > { %v796_v37 = vadd.f32 %v2545_v55, %v605_v36  ;;  %v607_v38 = vpop.f32.mrb[27].mxu1  ;;  %v1041_v39 = vsel %vm854_vm1, %v992_v35, 0.0 }
 0x150   : > { %917 = vadd.xlane.f32.xlu0 %v916_v34  ;;  %v830_v47 = vpop.f32.mrb[40].mxu0 }
 0x151   : > { %868 = vst.msk [vmem:[#allocation2 + $0x68] sm:$0xff] %vm854_vm1, %v796_v37  ;;  %v993_v42 = vmul.f32 %v796_v37, %v796_v37  ;;  %v832_v48 = vpop.f32.mrb[41].mxu0  ;;  %v919_v49 = vsel %vm854_vm1, %v796_v37, 0.0 }
 0x152   : > { %1042 = vadd.xlane.f32.xlu1 %v1041_v39  ;;  %v610_v43 = vpop.f32.mrb[28].mxu1 }
 0x153   : > { %v801_v44 = vadd.f32 %v2549_v62, %v610_v43  ;;  %v1044_v45 = vsel %vm854_vm1, %v993_v42, 0.0  ;;  %v612_v46 = vpop.f32.mrb[29].mxu1 }
 0x154   : > { %1045 = vadd.xlane.f32.xlu0 %v1044_v45  ;;  %v835_v56 = vpop.f32.mrb[42].mxu0 }
 0x155   : > { %869 = vst.msk [vmem:[#allocation2 + $0x70] sm:$0xff] %vm854_vm1, %v801_v44  ;;  %v922_v50 = vsel %vm854_vm1, %v801_v44, 0.0  ;;  %v994_v51 = vmul.f32 %v801_v44, %v801_v44  ;;  %v837_v57 = vpop.f32.mrb[43].mxu0 }
 0x156   : > { %920 = vadd.xlane.f32.xlu1 %v919_v49  ;;  %v615_v52 = vpop.f32.mrb[30].mxu1 }
 0x157   : > { %v806_v53 = vadd.f32 %v2555_v8, %v615_v52  ;;  %v617_v54 = vpop.f32.mrb[31].mxu1  ;;  %v1047_v55 = vsel %vm854_vm1, %v994_v51, 0.0 }
 0x158   : > { %923 = vadd.xlane.f32.xlu0 %v922_v50  ;;  %v840_v63 = vpop.f32.mrb[44].mxu0 }
 0x159   : > { %870 = vst.msk [vmem:[#allocation2 + $0x78] sm:$0xff] %vm854_vm1, %v806_v53  ;;  %v995_v58 = vmul.f32 %v806_v53, %v806_v53  ;;  %v842_v0 = vpop.f32.mrb[45].mxu0  ;;  %v925_v1 = vsel %vm854_vm1, %v806_v53, 0.0 }
 0x15a   : > { %1048 = vadd.xlane.f32.xlu1 %v1047_v55  ;;  %v620_v59 = vpop.f32.mrb[32].mxu1 }
 0x15b   : > { %v811_v60 = vadd.f32 %v2560_v16, %v620_v59  ;;  %v1050_v61 = vsel %vm854_vm1, %v995_v58, 0.0  ;;  %v622_v62 = vpop.f32.mrb[33].mxu1 }
 0x15c   : > { %1051 = vadd.xlane.f32.xlu0 %v1050_v61  ;;  %v845_v9 = vpop.f32.mrb[46].mxu0 }
 0x15d   : > { %871 = vst.msk [vmem:[#allocation2 + $0x80] sm:$0xff] %vm854_vm1, %v811_v60  ;;  %v928_v2 = vsel %vm854_vm1, %v811_v60, 0.0  ;;  %v996_v4 = vmul.f32 %v811_v60, %v811_v60  ;;  %v847_v10 = vpop.f32.mrb[47].mxu0 }
 0x15e   : > { %926 = vadd.xlane.f32.xlu1 %v925_v1  ;;  %v625_v5 = vpop.f32.mrb[34].mxu1 }
 0x15f   : > { %v816_v6 = vadd.f32 %v2567_v25, %v625_v5  ;;  %v627_v7 = vpop.f32.mrb[35].mxu1  ;;  %v1053_v8 = vsel %vm854_vm1, %v996_v4, 0.0 }
 0x160   : > { %929 = vadd.xlane.f32.xlu0 %v928_v2  ;;  %v850_v16 = vpop.f32.mrb[48].mxu0 }
 0x161   : > { %872 = vst.msk [vmem:[#allocation2 + $0x88] sm:$0xff] %vm854_vm1, %v816_v6  ;;  %v997_v11 = vmul.f32 %v816_v6, %v816_v6  ;;  %v852_v17 = vpop.f32.mrb[49].mxu0  ;;  %v931_v18 = vsel %vm854_vm1, %v816_v6, 0.0 }
 0x162   : > { %1054 = vadd.xlane.f32.xlu1 %v1053_v8  ;;  %v630_v12 = vpop.f32.mrb[36].mxu1 }
 0x163   : > { %v821_v13 = vadd.f32 %v2572_v31, %v630_v12  ;;  %v1056_v14 = vsel %vm854_vm1, %v997_v11, 0.0  ;;  %v632_v15 = vpop.f32.mrb[37].mxu1 }
 0x164   : > { %1057 = vadd.xlane.f32.xlu0 %v1056_v14 }
 0x165   : > { %873 = vst.msk [vmem:[#allocation2 + $0x90] sm:$0xff] %vm854_vm1, %v821_v13  ;;  %v934_v19 = vsel %vm854_vm1, %v821_v13, 0.0  ;;  %v998_v20 = vmul.f32 %v821_v13, %v821_v13 }
 0x166   : > { %932 = vadd.xlane.f32.xlu1 %v931_v18  ;;  %v635_v21 = vpop.f32.mrb[38].mxu1 }
 0x167   : > { %v826_v22 = vadd.f32 %v2579_v40, %v635_v21  ;;  %v637_v23 = vpop.f32.mrb[39].mxu1  ;;  %v1059_v24 = vsel %vm854_vm1, %v998_v20, 0.0  ;;  %v2643_v21 = vld [vmem:[%s2638_s30] sm:$0xff] }
 0x168   : > { %935 = vadd.xlane.f32.xlu0 %v934_v19 }
 0x169   : > { %874 = vst.msk [vmem:[#allocation2 + $0x98] sm:$0xff] %vm854_vm1, %v826_v22  ;;  %v999_v25 = vmul.f32 %v826_v22, %v826_v22  ;;  %v937_v30 = vsel %vm854_vm1, %v826_v22, 0.0 }
 0x16a   : > { %1060 = vadd.xlane.f32.xlu1 %v1059_v24  ;;  %v640_v26 = vpop.f32.mrb[40].mxu1 }
 0x16b   : > { %v1062_v27 = vsel %vm854_vm1, %v999_v25, 0.0  ;;  %v831_v28 = vadd.f32 %v830_v47, %v640_v26  ;;  %v642_v29 = vpop.f32.mrb[41].mxu1 }
 0x16c   : > { %1063 = vadd.xlane.f32.xlu0 %v1062_v27 }
 0x16d   : > { %875 = vst.msk [vmem:[#allocation2 + $0xa0] sm:$0xff] %vm854_vm1, %v831_v28  ;;  %v940_v3 = vsel %vm854_vm1, %v831_v28, 0.0  ;;  %v1000_v31 = vmul.f32 %v831_v28, %v831_v28 }
 0x16e   : > { %938 = vadd.xlane.f32.xlu1 %v937_v30  ;;  %v645_v32 = vpop.f32.mrb[42].mxu1 }
 0x16f   : > { %v836_v33 = vadd.f32 %v835_v56, %v645_v32  ;;  %v1065_v34 = vsel %vm854_vm1, %v1000_v31, 0.0  ;;  %v647_v35 = vpop.f32.mrb[43].mxu1 }
 0x170   : > { %941 = vadd.xlane.f32.xlu0 %v940_v3 }
 0x171   : > { %876 = vst.msk [vmem:[#allocation2 + $0xa8] sm:$0xff] %vm854_vm1, %v836_v33  ;;  %v1001_v36 = vmul.f32 %v836_v33, %v836_v33  ;;  %v943_v41 = vsel %vm854_vm1, %v836_v33, 0.0 }
 0x172   : > { %1066 = vadd.xlane.f32.xlu1 %v1065_v34  ;;  %v650_v37 = vpop.f32.mrb[44].mxu1 }
 0x173   : > { %v1068_v38 = vsel %vm854_vm1, %v1001_v36, 0.0  ;;  %v841_v39 = vadd.f32 %v840_v63, %v650_v37  ;;  %v652_v40 = vpop.f32.mrb[45].mxu1 }
 0x174   : > { %1069 = vadd.xlane.f32.xlu0 %v1068_v38 }
 0x175   : > { %877 = vst.msk [vmem:[#allocation2 + $0xb0] sm:$0xff] %vm854_vm1, %v841_v39  ;;  %v946_v42 = vsel %vm854_vm1, %v841_v39, 0.0  ;;  %v1002_v43 = vmul.f32 %v841_v39, %v841_v39  ;;  %v2655_v39 = vld [vmem:[%s2638_s30 + $0x8] sm:$0xff] }
 0x176   : > { %944 = vadd.xlane.f32.xlu1 %v943_v41  ;;  %v655_v44 = vpop.f32.mrb[46].mxu1 }
 0x177   : > { %v846_v45 = vadd.f32 %v845_v9, %v655_v44  ;;  %v1071_v46 = vsel %vm854_vm1, %v1002_v43, 0.0  ;;  %v657_v47 = vpop.f32.mrb[47].mxu1 }
 0x178   : > { %947 = vadd.xlane.f32.xlu0 %v946_v42 }
 0x179   : > { %878 = vst.msk [vmem:[#allocation2 + $0xb8] sm:$0xff] %vm854_vm1, %v846_v45  ;;  %v1003_v48 = vmul.f32 %v846_v45, %v846_v45  ;;  %v949_v52 = vsel %vm854_vm1, %v846_v45, 0.0 }
 0x17a   : > { %1072 = vadd.xlane.f32.xlu1 %v1071_v46  ;;  %v660_v49 = vpop.f32.mrb[48].mxu1 }
 0x17b   : > { %v1074_v50 = vsel %vm854_vm1, %v1003_v48, 0.0  ;;  %v851_v51 = vadd.f32 %v850_v16, %v660_v49  ;;  %v662_v53 = vpop.f32.mrb[49].mxu1 }
 0x17c   : > { %1075 = vadd.xlane.f32.xlu0 %v1074_v50 }
 0x17d   : > { %879 = vst.msk [vmem:[#allocation2 + $0xc0] sm:$0xff] %vm854_vm1, %v851_v51  ;;  %v952_v54 = vsel %vm854_vm1, %v851_v51, 0.0  ;;  %v1004_v55 = vmul.f32 %v851_v51, %v851_v51 }
 0x17e   : > { %950 = vadd.xlane.f32.xlu1 %v949_v52 }
 0x17f   : > { %v1077_v56 = vsel %vm854_vm1, %v1004_v55, 0.0 }
 0x180   : > { %953 = vadd.xlane.f32.xlu0 %v952_v54 }
 0x182   : > { %1078 = vadd.xlane.f32.xlu1 %v1077_v56  ;;  %v2667_v56 = vld [vmem:[%s2638_s30 + $0x10] sm:$0xff] }
 0x1ab   : > { %v882_v57 = vpop.xlane.xlu0 %881 }
 0x1ac   : > { %v1106_v58 = vmul.f32 0.020408163, %v882_v57 }
 0x1ad   : > { %v1007_v59 = vpop.xlane.xlu1 %1006 }
 0x1ae   : > { %v1156_v60 = vmul.f32 %v1106_v58, %v1106_v58  ;;  %v1131_v61 = vmul.f32 0.020408163, %v1007_v59 }
 0x1af   : > { %v885_v62 = vpop.xlane.xlu0 %884 }
 0x1b0   : > { %v1181_v63 = vsub.f32 %v1131_v61, %v1156_v60  ;;  %v2623_v0 = vmul.f32 0.020408163, %v885_v62 }
 0x1b2   : > { %v1206_v1 = vmax.f32 %v1181_v63, 0.0  ;;  %v1157_v6 = vmul.f32 %v2623_v0, %v2623_v0 }
 0x1b3   : > { %v1010_v2 = vpop.xlane.xlu0 %1009  ;;  %v888_v4 = vpop.xlane.xlu1 %887 }
 0x1b4   : > { %v1231_v5 = vadd.f32 1e-05, %v1206_v1  ;;  %v1132_v7 = vmul.f32 0.020408163, %v1010_v2  ;;  %v2627_v8 = vmul.f32 0.020408163, %v888_v4 }
 0x1b6   : > { %2115 = vrsqrt.f32 %v1231_v5  ;;  %v1182_v9 = vsub.f32 %v1132_v7, %v1157_v6  ;;  %v1158_v10 = vmul.f32 %v2627_v8, %v2627_v8 }
 0x1b7   : > { %v1013_v11 = vpop.xlane.xlu1 %1012 }
 0x1b8   : > { %v1207_v12 = vmax.f32 %v1182_v9, 0.0  ;;  %v1133_v13 = vmul.f32 0.020408163, %v1013_v11  ;;  %v2680_v9 = vld [vmem:[%s2638_s30 + $0x20] sm:$0xff] }
 0x1b9   : > { %v1016_v14 = vpop.xlane.xlu0 %1015 }
 0x1ba   : > { %v1232_v15 = vadd.f32 1e-05, %v1207_v12  ;;  %v1183_v16 = vsub.f32 %v1133_v13, %v1158_v10  ;;  %v1134_v23 = vmul.f32 0.020408163, %v1016_v14  ;;  %v2684_v14 = vld [vmem:[%s2638_s30 + $0x18] sm:$0xff] }
 0x1bb   : > { %v891_v17 = vpop.xlane.xlu1 %890 }
 0x1bc   : > { %2117 = vrsqrt.f32 %v1232_v15  ;;  %v1208_v18 = vmax.f32 %v1183_v16, 0.0  ;;  %v2640_v19 = vmul.f32 0.020408163, %v891_v17 }
 0x1bd   : > { %v894_v20 = vpop.xlane.xlu0 %893 }
 0x1be   : > { %v1233_v22 = vadd.f32 1e-05, %v1208_v18  ;;  %v1159_v24 = vmul.f32 %v2640_v19, %v2640_v19  ;;  %v2647_v25 = vmul.f32 0.020408163, %v894_v20 }
 0x1bf   : > { %v1019_v26 = vpop.xlane.xlu1 %1018 }
 0x1c0   : > { %v2116_v27 = vpop.eup %2115  ;;  %2119 = vrsqrt.f32 %v1233_v22  ;;  %v1184_v28 = vsub.f32 %v1134_v23, %v1159_v24  ;;  %v1160_v29 = vmul.f32 %v2647_v25, %v2647_v25  ;;  %v1135_v30 = vmul.f32 0.020408163, %v1019_v26 }
 0x1c1   : > { %v1022_v3 = vpop.xlane.xlu0 %1021  ;;  %v1306_v31 = vmul.f32 %v2116_v27, %v2643_v21 }
 0x1c2   : > { %v1209_v32 = vmax.f32 %v1184_v28, 0.0  ;;  %v1185_v33 = vsub.f32 %v1135_v30, %v1160_v29  ;;  %v1136_v43 = vmul.f32 0.020408163, %v1022_v3 }
 0x1c3   : > { %v897_v34 = vpop.xlane.xlu1 %896  ;;  %1533 = vperm.xlu1 %2111, %v1306_v31   ;;  %v1331_v35 = vmul.f32 %v1306_v31, %v1106_v58 }
 0x1c4   : > { %v1234_v36 = vadd.f32 1e-05, %v1209_v32  ;;  %v1210_v37 = vmax.f32 %v1185_v33, 0.0  ;;  %v2652_v38 = vmul.f32 0.020408163, %v897_v34  ;;  %v2699_v34 = vld [vmem:[%s2638_s30 + $0x30] sm:$0xff] }
 0x1c5   : > { %v900_v40 = vpop.xlane.xlu0 %899  ;;  %1381 = vrot.lane.b32.xlu0 %v1331_v35, %s2175_s23 }
 0x1c6   : > { %v2118_v41 = vpop.eup %2117  ;;  %v1235_v42 = vadd.f32 1e-05, %v1210_v37  ;;  %v1161_v44 = vmul.f32 %v2652_v38, %v2652_v38  ;;  %v2660_v45 = vmul.f32 0.020408163, %v900_v40  ;;  %2121 = vrsqrt.f32 %v1234_v36 }
 0x1c7   : > { %v1025_v46 = vpop.xlane.xlu1 %1024  ;;  %v1307_v47 = vmul.f32 %v2118_v41, %v2655_v39  ;;  %v2704_v41 = vld [vmem:[%s2638_s30 + $0x28] sm:$0xff] }
 0x1c8   : > { %2123 = vrsqrt.f32 %v1235_v42  ;;  %v1186_v48 = vsub.f32 %v1136_v43, %v1161_v44  ;;  %v1162_v49 = vmul.f32 %v2660_v45, %v2660_v45  ;;  %v1137_v50 = vmul.f32 0.020408163, %v1025_v46 }
 0x1c9   : > { %v1028_v51 = vpop.xlane.xlu0 %1027  ;;  %1538 = vperm.xlu0 %2112, %v1307_v47   ;;  %v1332_v52 = vmul.f32 %v1307_v47, %v2623_v0 }
 0x1ca   : > { %v2120_v53 = vpop.eup %2119  ;;  %v1211_v54 = vmax.f32 %v1186_v48, 0.0  ;;  %v1187_v55 = vsub.f32 %v1137_v50, %v1162_v49  ;;  %v1138_v1 = vmul.f32 0.020408163, %v1028_v51 }
 0x1cb   : > { %v903_v57 = vpop.xlane.xlu1 %902  ;;  %1383 = vrot.lane.b32.xlu1 %v1332_v52, %s2175_s23  ;;  %v1308_v62 = vmul.f32 %v2120_v53, %v2667_v56 }
 0x1cc   : > { %v1236_v58 = vadd.f32 1e-05, %v1211_v54  ;;  %v1212_v59 = vmax.f32 %v1187_v55, 0.0  ;;  %v2670_v60 = vmul.f32 0.020408163, %v903_v57 }
 0x1cd   : > { %v906_v61 = vpop.xlane.xlu0 %905  ;;  %v1333_v12 = vmul.f32 %v1308_v62, %v2627_v8 }
 0x1ce   : > { %v1237_v63 = vadd.f32 1e-05, %v1212_v59  ;;  %v1163_v0 = vmul.f32 %v2670_v60, %v2670_v60  ;;  %v2675_v2 = vmul.f32 0.020408163, %v906_v61  ;;  %2125 = vrsqrt.f32 %v1236_v58  ;;  %v2719_v61 = vld [vmem:[%s2638_s30 + $0x40] sm:$0xff] }
 0x1cf   : > { %v1031_v4 = vpop.xlane.xlu1 %1030  ;;  %1543 = vperm.xlu1 %2111, %v1308_v62  }
 0x1d0   : > { %2127 = vrsqrt.f32 %v1237_v63  ;;  %v1188_v5 = vsub.f32 %v1138_v1, %v1163_v0  ;;  %v1164_v6 = vmul.f32 %v2675_v2, %v2675_v2  ;;  %v1139_v7 = vmul.f32 0.020408163, %v1031_v4  ;;  %v2122_v10 = vpop.eup %2121  ;;  %v2724_v4 = vld [vmem:[%s2638_s30 + $0x38] sm:$0xff] }
 0x1d1   : > { %v1034_v11 = vpop.xlane.xlu0 %1033  ;;  %v1309_v24 = vmul.f32 %v2122_v10, %v2684_v14 }
 0x1d2   : > { %v2124_v13 = vpop.eup %2123  ;;  %v1213_v15 = vmax.f32 %v1188_v5, 0.0  ;;  %v1189_v16 = vsub.f32 %v1139_v7, %v1164_v6  ;;  %v1140_v27 = vmul.f32 0.020408163, %v1034_v11 }
 0x1d3   : > { %v909_v17 = vpop.xlane.xlu1 %908  ;;  %1385 = vrot.lane.b32.xlu1 %v1333_v12, %s2175_s23  ;;  %v1310_v18 = vmul.f32 %v2124_v13, %v2680_v9  ;;  %v1334_v36 = vmul.f32 %v1309_v24, %v2640_v19 }
 0x1d4   : > { %v1238_v20 = vadd.f32 1e-05, %v1213_v15  ;;  %v1214_v22 = vmax.f32 %v1189_v16, 0.0  ;;  %v2688_v23 = vmul.f32 0.020408163, %v909_v17 }
 0x1d5   : > { %v912_v26 = vpop.xlane.xlu0 %911  ;;  %1553 = vperm.xlu0 %2112, %v1310_v18   ;;  %v1335_v3 = vmul.f32 %v1310_v18, %v2647_v25 }
 0x1d6   : > { %v1239_v8 = vadd.f32 1e-05, %v1214_v22  ;;  %v1165_v28 = vmul.f32 %v2688_v23, %v2688_v23  ;;  %v2693_v29 = vmul.f32 0.020408163, %v912_v26  ;;  %2129 = vrsqrt.f32 %v1238_v20 }
 0x1d7   : > { %v1037_v30 = vpop.xlane.xlu1 %1036  ;;  %1548 = vperm.xlu1 %2111, %v1309_v24  }
 0x1d8   : > { %2131 = vrsqrt.f32 %v1239_v8  ;;  %v1190_v31 = vsub.f32 %v1140_v27, %v1165_v28  ;;  %v1166_v32 = vmul.f32 %v2693_v29, %v2693_v29  ;;  %v1141_v33 = vmul.f32 0.020408163, %v1037_v30  ;;  %v2126_v35 = vpop.eup %2125  ;;  %v2739_v27 = vld [vmem:[%s2638_s30 + $0x50] sm:$0xff] }
 0x1d9   : > { %v1040_v37 = vpop.xlane.xlu0 %1039  ;;  %1389 = vrot.lane.b32.xlu0 %v1335_v3, %s2175_s23  ;;  %v1311_v19 = vmul.f32 %v2126_v35, %v2704_v41 }
 0x1da   : > { %v2128_v40 = vpop.eup %2127  ;;  %v1215_v42 = vmax.f32 %v1190_v31, 0.0  ;;  %v1191_v43 = vsub.f32 %v1141_v33, %v1166_v32  ;;  %v1142_v51 = vmul.f32 0.020408163, %v1040_v37  ;;  %v2744_v32 = vld [vmem:[%s2638_s30 + $0x48] sm:$0xff] }
 0x1db   : > { %v915_v25 = vpop.xlane.xlu1 %914  ;;  %1387 = vrot.lane.b32.xlu1 %v1334_v36, %s2175_s23  ;;  %v1312_v44 = vmul.f32 %v2128_v40, %v2699_v34  ;;  %v1336_v63 = vmul.f32 %v1311_v19, %v2652_v38 }
 0x1dc   : > { %v1240_v46 = vadd.f32 1e-05, %v1215_v42  ;;  %v1216_v47 = vmax.f32 %v1191_v43, 0.0  ;;  %v2708_v48 = vmul.f32 0.020408163, %v915_v25 }
 0x1dd   : > { %v918_v49 = vpop.xlane.xlu0 %917  ;;  %1563 = vperm.xlu0 %2112, %v1312_v44   ;;  %v1337_v55 = vmul.f32 %v1312_v44, %v2660_v45 }
 0x1de   : > { %v1241_v50 = vadd.f32 1e-05, %v1216_v47  ;;  %v1167_v52 = vmul.f32 %v2708_v48, %v2708_v48  ;;  %v2713_v53 = vmul.f32 0.020408163, %v918_v49  ;;  %2133 = vrsqrt.f32 %v1240_v46 }
 0x1df   : > { %v1043_v54 = vpop.xlane.xlu1 %1042  ;;  %1558 = vperm.xlu1 %2111, %v1311_v19  }
 0x1e0   : > { %2135 = vrsqrt.f32 %v1241_v50  ;;  %v1192_v57 = vsub.f32 %v1142_v51, %v1167_v52  ;;  %v1168_v58 = vmul.f32 %v2713_v53, %v2713_v53  ;;  %v1143_v59 = vmul.f32 0.020408163, %v1043_v54  ;;  %v2130_v62 = vpop.eup %2129  ;;  %v2759_v54 = vld [vmem:[%s2638_s30 + $0x60] sm:$0xff] }
 0x1e1   : > { %v1046_v1 = vpop.xlane.xlu0 %1045  ;;  %1393 = vrot.lane.b32.xlu0 %v1337_v55, %s2175_s23  ;;  %v1313_v38 = vmul.f32 %v2130_v62, %v2724_v4  ;;  %v2764_v62 = vld [vmem:[%s2638_s30 + $0x58] sm:$0xff] }
 0x1e2   : > { %v2132_v0 = vpop.eup %2131  ;;  %v1217_v5 = vmax.f32 %v1192_v57, 0.0  ;;  %v1193_v6 = vsub.f32 %v1143_v59, %v1168_v58  ;;  %v1144_v16 = vmul.f32 0.020408163, %v1046_v1 }
 0x1e3   : > { %v921_v45 = vpop.xlane.xlu1 %920  ;;  %1391 = vrot.lane.b32.xlu1 %v1336_v63, %s2175_s23  ;;  %v1314_v7 = vmul.f32 %v2132_v0, %v2719_v61  ;;  %v1338_v30 = vmul.f32 %v1313_v38, %v2670_v60 }
 0x1e4   : > { %v1242_v10 = vadd.f32 1e-05, %v1217_v5  ;;  %v1218_v11 = vmax.f32 %v1193_v6, 0.0  ;;  %v2728_v12 = vmul.f32 0.020408163, %v921_v45 }
 0x1e5   : > { %v924_v13 = vpop.xlane.xlu0 %923  ;;  %1573 = vperm.xlu0 %2112, %v1314_v7   ;;  %v1339_v22 = vmul.f32 %v1314_v7, %v2675_v2 }
 0x1e6   : > { %v1243_v15 = vadd.f32 1e-05, %v1218_v11  ;;  %v1169_v17 = vmul.f32 %v2728_v12, %v2728_v12  ;;  %v2733_v18 = vmul.f32 0.020408163, %v924_v13  ;;  %2137 = vrsqrt.f32 %v1242_v10 }
 0x1e7   : > { %v1049_v20 = vpop.xlane.xlu1 %1048  ;;  %1568 = vperm.xlu1 %2111, %v1313_v38  }
 0x1e8   : > { %2139 = vrsqrt.f32 %v1243_v15  ;;  %v1194_v24 = vsub.f32 %v1144_v16, %v1169_v17  ;;  %v1170_v26 = vmul.f32 %v2733_v18, %v2733_v18  ;;  %v1145_v8 = vmul.f32 0.020408163, %v1049_v20  ;;  %v2134_v28 = vpop.eup %2133 }
 0x1e9   : > { %v1052_v3 = vpop.xlane.xlu0 %1051  ;;  %1397 = vrot.lane.b32.xlu0 %v1339_v22, %s2175_s23  ;;  %v1315_v60 = vmul.f32 %v2134_v28, %v2744_v32 }
 0x1ea   : > { %v2136_v31 = vpop.eup %2135  ;;  %v1219_v33 = vmax.f32 %v1194_v24, 0.0  ;;  %v1195_v35 = vsub.f32 %v1145_v8, %v1170_v26  ;;  %v1146_v44 = vmul.f32 0.020408163, %v1052_v3  ;;  %v2779_v24 = vld [vmem:[%s2638_s30 + $0x70] sm:$0xff]  ;;  %v2784_v3 = vld [vmem:[%s2638_s30 + $0x68] sm:$0xff] }
 0x1eb   : > { %v927_v2 = vpop.xlane.xlu1 %926  ;;  %1395 = vrot.lane.b32.xlu1 %v1338_v30, %s2175_s23  ;;  %v1316_v36 = vmul.f32 %v2136_v31, %v2739_v27  ;;  %v1340_v57 = vmul.f32 %v1315_v60, %v2688_v23 }
 0x1ec   : > { %v1244_v37 = vadd.f32 1e-05, %v1219_v33  ;;  %v1220_v40 = vmax.f32 %v1195_v35, 0.0  ;;  %v2748_v42 = vmul.f32 0.020408163, %v927_v2 }
 0x1ed   : > { %v930_v43 = vpop.xlane.xlu0 %929  ;;  %1583 = vperm.xlu0 %2112, %v1316_v36   ;;  %v1341_v49 = vmul.f32 %v1316_v36, %v2693_v29 }
 0x1ee   : > { %v1245_v25 = vadd.f32 1e-05, %v1220_v40  ;;  %v1171_v46 = vmul.f32 %v2748_v42, %v2748_v42  ;;  %v2753_v47 = vmul.f32 0.020408163, %v930_v43  ;;  %2141 = vrsqrt.f32 %v1244_v37 }
 0x1ef   : > { %v1055_v19 = vpop.xlane.xlu1 %1054  ;;  %1578 = vperm.xlu1 %2111, %v1315_v60  }
 0x1f0   : > { %2143 = vrsqrt.f32 %v1245_v25  ;;  %v1196_v50 = vsub.f32 %v1146_v44, %v1171_v46  ;;  %v1172_v51 = vmul.f32 %v2753_v47, %v2753_v47  ;;  %v1147_v52 = vmul.f32 0.020408163, %v1055_v19  ;;  %v2138_v55 = vpop.eup %2137 }
 0x1f1   : > { %v1058_v58 = vpop.xlane.xlu0 %1057  ;;  %1401 = vrot.lane.b32.xlu0 %v1341_v49, %s2175_s23  ;;  %v1317_v23 = vmul.f32 %v2138_v55, %v2764_v62 }
 0x1f2   : > { %v2140_v59 = vpop.eup %2139  ;;  %v1221_v63 = vmax.f32 %v1196_v50, 0.0  ;;  %v1197_v1 = vsub.f32 %v1147_v52, %v1172_v51  ;;  %v1148_v11 = vmul.f32 0.020408163, %v1058_v58  ;;  %v2799_v52 = vld [vmem:[%s2638_s30 + $0x80] sm:$0xff] }
 0x1f3   : > { %v933_v29 = vpop.xlane.xlu1 %932  ;;  %1399 = vrot.lane.b32.xlu1 %v1340_v57, %s2175_s23  ;;  %v1318_v0 = vmul.f32 %v2140_v59, %v2759_v54  ;;  %v1342_v8 = vmul.f32 %v1317_v23, %v2708_v48 }
 0x1f4   : > { %v1246_v5 = vadd.f32 1e-05, %v1221_v63  ;;  %v1222_v6 = vmax.f32 %v1197_v1, 0.0  ;;  %v2768_v45 = vmul.f32 0.020408163, %v933_v29  ;;  %v2804_v63 = vld [vmem:[%s2638_s30 + $0x78] sm:$0xff] }
 0x1f5   : > { %v936_v7 = vpop.xlane.xlu0 %935  ;;  %1593 = vperm.xlu0 %2112, %v1318_v0   ;;  %v1343_v16 = vmul.f32 %v1318_v0, %v2713_v53 }
 0x1f6   : > { %v1247_v10 = vadd.f32 1e-05, %v1222_v6  ;;  %v1173_v38 = vmul.f32 %v2768_v45, %v2768_v45  ;;  %v2773_v13 = vmul.f32 0.020408163, %v936_v7  ;;  %2145 = vrsqrt.f32 %v1246_v5 }
 0x1f7   : > { %v1061_v15 = vpop.xlane.xlu1 %1060  ;;  %1588 = vperm.xlu1 %2111, %v1317_v23  }
 0x1f8   : > { %2147 = vrsqrt.f32 %v1247_v10  ;;  %v1198_v17 = vsub.f32 %v1148_v11, %v1173_v38  ;;  %v1174_v20 = vmul.f32 %v2773_v13, %v2773_v13  ;;  %v1149_v22 = vmul.f32 0.020408163, %v1061_v15  ;;  %v2142_v26 = vpop.eup %2141 }
 0x1f9   : > { %v1064_v28 = vpop.xlane.xlu0 %1063  ;;  %1405 = vrot.lane.b32.xlu0 %v1343_v16, %s2175_s23  ;;  %v1319_v48 = vmul.f32 %v2142_v26, %v2784_v3 }
 0x1fa   : > { %v2144_v30 = vpop.eup %2143  ;;  %v1223_v31 = vmax.f32 %v1198_v17, 0.0  ;;  %v1199_v33 = vsub.f32 %v1149_v22, %v1174_v20  ;;  %v1150_v43 = vmul.f32 0.020408163, %v1064_v28 }
 0x1fb   : > { %v939_v53 = vpop.xlane.xlu1 %938  ;;  %1403 = vrot.lane.b32.xlu1 %v1342_v8, %s2175_s23  ;;  %v1320_v35 = vmul.f32 %v2144_v30, %v2779_v24  ;;  %v1344_v57 = vmul.f32 %v1319_v48, %v2728_v12  ;;  %v2819_v8 = vld [vmem:[%s2638_s30 + $0x90] sm:$0xff] }
 0x1fc   : > { %v1248_v2 = vadd.f32 1e-05, %v1223_v31  ;;  %v1224_v36 = vmax.f32 %v1199_v33, 0.0  ;;  %v2788_v37 = vmul.f32 0.020408163, %v939_v53  ;;  %v2824_v53 = vld [vmem:[%s2638_s30 + $0x88] sm:$0xff] }
 0x1fd   : > { %v942_v40 = vpop.xlane.xlu0 %941  ;;  %1603 = vperm.xlu0 %2112, %v1320_v35   ;;  %v1345_v19 = vmul.f32 %v1320_v35, %v2733_v18 }
 0x1fe   : > { %v1249_v60 = vadd.f32 1e-05, %v1224_v36  ;;  %v1175_v25 = vmul.f32 %v2788_v37, %v2788_v37  ;;  %v2793_v44 = vmul.f32 0.020408163, %v942_v40  ;;  %2149 = vrsqrt.f32 %v1248_v2 }
 0x1ff   : > { %v1067_v46 = vpop.xlane.xlu1 %1066  ;;  %1598 = vperm.xlu1 %2111, %v1319_v48  }
 0x200   : > { %2151 = vrsqrt.f32 %v1249_v60  ;;  %v1200_v49 = vsub.f32 %v1150_v43, %v1175_v25  ;;  %v1176_v50 = vmul.f32 %v2793_v44, %v2793_v44  ;;  %v1151_v51 = vmul.f32 0.020408163, %v1067_v46  ;;  %v2146_v55 = vpop.eup %2145 }
 0x201   : > { %v1070_v58 = vpop.xlane.xlu0 %1069  ;;  %1409 = vrot.lane.b32.xlu0 %v1345_v19, %s2175_s23  ;;  %v1321_v12 = vmul.f32 %v2146_v55, %v2804_v63 }
 0x202   : > { %v2148_v59 = vpop.eup %2147  ;;  %v1225_v1 = vmax.f32 %v1200_v49, 0.0  ;;  %v1201_v29 = vsub.f32 %v1151_v51, %v1176_v50  ;;  %v1152_v18 = vmul.f32 0.020408163, %v1070_v58 }
 0x203   : > { %v945_v0 = vpop.xlane.xlu1 %944  ;;  %1407 = vrot.lane.b32.xlu1 %v1344_v57, %s2175_s23  ;;  %v1322_v5 = vmul.f32 %v2148_v59, %v2799_v52  ;;  %v1346_v30 = vmul.f32 %v1321_v12, %v2748_v42  ;;  %v2831_v59 = vld [vmem:[%s2638_s30 + $0xa0] sm:$0xff] }
 0x204   : > { %v1250_v6 = vadd.f32 1e-05, %v1225_v1  ;;  %v1226_v23 = vmax.f32 %v1201_v29, 0.0  ;;  %v2808_v7 = vmul.f32 0.020408163, %v945_v0  ;;  %v2836_v0 = vld [vmem:[%s2638_s30 + $0x98] sm:$0xff] }
 0x205   : > { %v948_v10 = vpop.xlane.xlu0 %947  ;;  %1613 = vperm.xlu0 %2112, %v1322_v5   ;;  %v1347_v17 = vmul.f32 %v1322_v5, %v2753_v47 }
 0x206   : > { %v1251_v11 = vadd.f32 1e-05, %v1226_v23  ;;  %v1177_v38 = vmul.f32 %v2808_v7, %v2808_v7  ;;  %v2813_v15 = vmul.f32 0.020408163, %v948_v10  ;;  %2153 = vrsqrt.f32 %v1250_v6 }
 0x207   : > { %v1073_v16 = vpop.xlane.xlu1 %1072  ;;  %1608 = vperm.xlu1 %2111, %v1321_v12  }
 0x208   : > { %2155 = vrsqrt.f32 %v1251_v11  ;;  %v1202_v20 = vsub.f32 %v1152_v18, %v1177_v38  ;;  %v1178_v22 = vmul.f32 %v2813_v15, %v2813_v15  ;;  %v1153_v26 = vmul.f32 0.020408163, %v1073_v16  ;;  %v2150_v28 = vpop.eup %2149  ;;  %v2842_v11 = vld [vmem:[%s2638_s30 + $0xa8] sm:$0xff] }
 0x209   : > { %v1076_v31 = vpop.xlane.xlu0 %1075  ;;  %1413 = vrot.lane.b32.xlu0 %v1347_v17, %s2175_s23  ;;  %v1323_v42 = vmul.f32 %v2150_v28, %v2824_v53  ;;  %v2846_v17 = vld [vmem:[%s2638_s30 + $0xb0] sm:$0xff] }
 0x20a   : > { %v2152_v33 = vpop.eup %2151  ;;  %v1227_v35 = vmax.f32 %v1202_v20, 0.0  ;;  %v1203_v2 = vsub.f32 %v1153_v26, %v1178_v22  ;;  %v1154_v47 = vmul.f32 0.020408163, %v1076_v31  ;;  %v2856_v31 = vld [vmem:[%s2638_s30 + $0xb8] sm:$0xff] }
 0x20b   : > { %v951_v36 = vpop.xlane.xlu1 %950  ;;  %1411 = vrot.lane.b32.xlu1 %v1346_v30, %s2175_s23  ;;  %v1324_v48 = vmul.f32 %v2152_v33, %v2819_v8  ;;  %v1348_v29 = vmul.f32 %v1323_v42, %v2768_v45  ;;  %v2861_v33 = vld [vmem:[%s2638_s30 + $0xc0] sm:$0xff] }
 0x20c   : > { %v1252_v40 = vadd.f32 1e-05, %v1227_v35  ;;  %v1228_v60 = vmax.f32 %v1203_v2, 0.0  ;;  %v1129_v43 = vmul.f32 0.020408163, %v951_v36 }
 0x20d   : > { %1623 = vperm.xlu0 %2112, %v1324_v48   ;;  %v954_v25 = vpop.xlane.xlu0 %953  ;;  %v1349_v51 = vmul.f32 %v1324_v48, %v2773_v13 }
 0x20e   : > { %2157 = vrsqrt.f32 %v1252_v40  ;;  %v1253_v46 = vadd.f32 1e-05, %v1228_v60  ;;  %v1179_v19 = vmul.f32 %v1129_v43, %v1129_v43  ;;  %v1130_v49 = vmul.f32 0.020408163, %v954_v25 }
 0x20f   : > { %1618 = vperm.xlu1 %2111, %v1323_v42   ;;  %v1079_v50 = vpop.xlane.xlu1 %1078 }
 0x210   : > { %2159 = vrsqrt.f32 %v1253_v46  ;;  %v1204_v55 = vsub.f32 %v1154_v47, %v1179_v19  ;;  %v1180_v57 = vmul.f32 %v1130_v49, %v1130_v49  ;;  %v1155_v58 = vmul.f32 0.020408163, %v1079_v50  ;;  %v2154_v1 = vpop.eup %2153 }
 0x211   : > { %1417 = vrot.lane.b32.xlu0 %v1349_v51, %s2175_s23  ;;  %v1325_v10 = vmul.f32 %v2154_v1, %v2836_v0 }
 0x212   : > { %v2156_v18 = vpop.eup %2155  ;;  %v1229_v5 = vmax.f32 %v1204_v55, 0.0  ;;  %v1205_v6 = vsub.f32 %v1155_v58, %v1180_v57 }
 0x213   : > { %1415 = vrot.lane.b32.xlu1 %v1348_v29, %s2175_s23  ;;  %v1326_v13 = vmul.f32 %v2156_v18, %v2831_v59  ;;  %v1350_v20 = vmul.f32 %v1325_v10, %v2788_v37 }
 0x214   : > { %v1254_v23 = vadd.f32 1e-05, %v1229_v5  ;;  %v1230_v12 = vmax.f32 %v1205_v6, 0.0 }
 0x215   : > { %1633 = vperm.xlu0 %2112, %v1326_v13   ;;  %v1351_v38 = vmul.f32 %v1326_v13, %v2793_v44 }
 0x216   : > { %2161 = vrsqrt.f32 %v1254_v23  ;;  %v1255_v45 = vadd.f32 1e-05, %v1230_v12 }
 0x217   : > { %1628 = vperm.xlu1 %2111, %v1325_v10  }
 0x218   : > { %v2158_v16 = vpop.eup %2157  ;;  %2163 = vrsqrt.f32 %v1255_v45 }
 0x219   : > { %v1327_v22 = vmul.f32 %v2158_v16, %v2842_v11  ;;  %1421 = vrot.lane.b32.xlu0 %v1351_v38, %s2175_s23 }
 0x21a   : > { %v2160_v26 = vpop.eup %2159 }
 0x21b   : > { %1419 = vrot.lane.b32.xlu1 %v1350_v20, %s2175_s23  ;;  %v1328_v28 = vmul.f32 %v2160_v26, %v2846_v17  ;;  %v1352_v30 = vmul.f32 %v1327_v22, %v2808_v7 }
 0x21d   : > { %v1353_v44 = vmul.f32 %v1328_v28, %v2813_v15  ;;  %v2176_v15 = vmov 1  }
 0x21f   : > { %1423 = vrot.lane.b32.xlu1 %v1352_v30, %s2175_s23  ;;  %1425 = vrot.lane.b32.xlu0 %v1353_v44, %s2175_s23 }
 0x220   : > { %v2162_v37 = vpop.eup %2161 }
 0x221   : > { %v1329_v35 = vmul.f32 %v2162_v37, %v2856_v31 }
 0x222   : > { %v2164_v2 = vpop.eup %2163 }
 0x223   : > { %v1354_v47 = vmul.f32 %v1329_v35, %v1129_v43  ;;  %v1330_v36 = vmul.f32 %v2164_v2, %v2861_v33 }
 0x225   : > { %1427 = vrot.lane.b32.xlu1 %v1354_v47, %s2175_s23  ;;  %v1355_v7 = vmul.f32 %v1330_v36, %v1130_v49 }
 0x227   : > { %1429 = vrot.lane.b32.xlu0 %v1355_v7, %s2175_s23 }
 0x229   : > { %1638 = vperm.xlu1 %2111, %v1327_v22  }
 0x22b   : > { %1643 = vperm.xlu0 %2112, %v1328_v28  }
 0x22d   : > { %1648 = vperm.xlu1 %2111, %v1329_v35  }
 0x22f   : > { %1653 = vperm.xlu0 %2112, %v1330_v36  }
 0x231   : > { %2113 = vset.pattern.permute.xlu1 %v2176_v15 }
 0x233   : > { %2114 = vset.pattern.permute.xlu0 %v2176_v15 }
 0x237   : > { %v1382_v48 = vpop.permute.xlu0 %1381 }
 0x238   : > { %v1456_v40 = vsub.f32 %v2643_v21, %v1382_v48 }
 0x23a   : > { %1708 = vperm.xlu1 %2113, %v1456_v40  }
 0x242   : > { %v2868_v60 = vpop.permute.xlu1 %1533 }
 0x246   : > { %v1384_v43 = vpop.permute.xlu1 %1383 }
 0x247   : > { %v1457_v42 = vsub.f32 %v2655_v39, %v1384_v43 }
 0x248   : > { %v2873_v46 = vpop.permute.xlu0 %1538 }
 0x249   : > { %1713 = vperm.xlu0 %2114, %v1457_v42  }
 0x24e   : > { %v2871_v25 = vpop.permute.xlu1 %1543 }
 0x252   : > { %v1386_v19 = vpop.permute.xlu1 %1385 }
 0x253   : > { %v1458_v49 = vsub.f32 %v2667_v56, %v1386_v19 }
 0x254   : > { %v2876_v50 = vpop.permute.xlu0 %1553 }
 0x255   : > { %1718 = vperm.xlu1 %2113, %v1458_v49  }
 0x256   : > { %v2878_v51 = vpop.permute.xlu1 %1548 }
 0x258   : > { %v1390_v21 = vpop.permute.xlu0 %1389 }
 0x259   : > { %v1460_v55 = vsub.f32 %v2680_v9, %v1390_v21 }
 0x25a   : > { %v1388_v57 = vpop.permute.xlu1 %1387 }
 0x25b   : > { %v1459_v58 = vsub.f32 %v2684_v14, %v1388_v57  ;;  %1728 = vperm.xlu0 %2114, %v1460_v55  }
 0x25c   : > { %v2882_v39 = vpop.permute.xlu0 %1563 }
 0x25d   : > { %1723 = vperm.xlu1 %2113, %v1459_v58  }
 0x25e   : > { %v2884_v1 = vpop.permute.xlu1 %1558 }
 0x260   : > { %v1394_v29 = vpop.permute.xlu0 %1393 }
 0x261   : > { %v1462_v56 = vsub.f32 %v2699_v34, %v1394_v29 }
 0x262   : > { %v1392_v18 = vpop.permute.xlu1 %1391 }
 0x263   : > { %v1461_v5 = vsub.f32 %v2704_v41, %v1392_v18  ;;  %1738 = vperm.xlu0 %2114, %v1462_v56  }
 0x264   : > { %v2888_v6 = vpop.permute.xlu0 %1573 }
 0x265   : > { %1733 = vperm.xlu1 %2113, %v1461_v5  }
 0x266   : > { %v2890_v9 = vpop.permute.xlu1 %1568 }
 0x268   : > { %v1398_v13 = vpop.permute.xlu0 %1397 }
 0x269   : > { %v1464_v14 = vsub.f32 %v2719_v61, %v1398_v13  ;;  %v1482_v13 = vld [vmem:[%s2940_s8 + $0x8] sm:$0xff] }
 0x26a   : > { %v1396_v23 = vpop.permute.xlu1 %1395 }
 0x26b   : > { %v1463_v12 = vsub.f32 %v2724_v4, %v1396_v23  ;;  %1748 = vperm.xlu0 %2114, %v1464_v14   ;;  %v1483_v14 = vld [vmem:[%s2940_s8 + $0x10] sm:$0xff]  ;;  %v1484_v23 = vld [vmem:[%s2940_s8 + $0x18] sm:$0xff] }
 0x26c   : > { %v2894_v10 = vpop.permute.xlu0 %1583 }
 0x26d   : > { %1743 = vperm.xlu1 %2113, %v1463_v12   ;;  %v1487_v12 = vld [vmem:[%s2940_s8 + $0x30] sm:$0xff] }
 0x26e   : > { %v2896_v34 = vpop.permute.xlu1 %1578 }
 0x270   : > { %v1402_v45 = vpop.permute.xlu0 %1401 }
 0x271   : > { %v1466_v41 = vsub.f32 %v2739_v27, %v1402_v45  ;;  %v1486_v45 = vld [vmem:[%s2940_s8 + $0x28] sm:$0xff] }
 0x272   : > { %v1400_v38 = vpop.permute.xlu1 %1399 }
 0x273   : > { %v1465_v16 = vsub.f32 %v2744_v32, %v1400_v38  ;;  %1758 = vperm.xlu0 %2114, %v1466_v41   ;;  %v1489_v41 = vld [vmem:[%s2940_s8 + $0x40] sm:$0xff]  ;;  %v2960_v38 = vld [vmem:[%s2940_s8 + $0x38] sm:$0xff] }
 0x274   : > { %v2900_v20 = vpop.permute.xlu0 %1593 }
 0x275   : > { %1753 = vperm.xlu1 %2113, %v1465_v16   ;;  %v2963_v16 = vld [vmem:[%s2940_s8 + $0x50] sm:$0xff] }
 0x276   : > { %v2902_v61 = vpop.permute.xlu1 %1588 }
 0x278   : > { %v1406_v22 = vpop.permute.xlu0 %1405 }
 0x279   : > { %v1468_v4 = vsub.f32 %v2759_v54, %v1406_v22  ;;  %v2966_v22 = vld [vmem:[%s2940_s8 + $0x48] sm:$0xff] }
 0x27a   : > { %v1404_v26 = vpop.permute.xlu1 %1403 }
 0x27b   : > { %v1467_v28 = vsub.f32 %v2764_v62, %v1404_v26  ;;  %1768 = vperm.xlu0 %2114, %v1468_v4   ;;  %v2969_v4 = vld [vmem:[%s2940_s8 + $0x60] sm:$0xff]  ;;  %v2972_v26 = vld [vmem:[%s2940_s8 + $0x58] sm:$0xff] }
 0x27c   : > { %v2906_v30 = vpop.permute.xlu0 %1603 }
 0x27d   : > { %1763 = vperm.xlu1 %2113, %v1467_v28   ;;  %v2975_v28 = vld [vmem:[%s2940_s8 + $0x70] sm:$0xff] }
 0x27e   : > { %v2908_v27 = vpop.permute.xlu1 %1598 }
 0x280   : > { %v1410_v44 = vpop.permute.xlu0 %1409 }
 0x281   : > { %v1470_v32 = vsub.f32 %v2779_v24, %v1410_v44  ;;  %v2978_v44 = vld [vmem:[%s2940_s8 + $0x68] sm:$0xff] }
 0x282   : > { %v1408_v37 = vpop.permute.xlu1 %1407 }
 0x283   : > { %v1469_v35 = vsub.f32 %v2784_v3, %v1408_v37  ;;  %1778 = vperm.xlu0 %2114, %v1470_v32   ;;  %v2981_v32 = vld [vmem:[%s2940_s8 + $0x80] sm:$0xff]  ;;  %v2984_v37 = vld [vmem:[%s2940_s8 + $0x78] sm:$0xff] }
 0x284   : > { %v2912_v2 = vpop.permute.xlu0 %1613 }
 0x285   : > { %1773 = vperm.xlu1 %2113, %v1469_v35   ;;  %v2987_v35 = vld [vmem:[%s2940_s8 + $0x90] sm:$0xff] }
 0x286   : > { %v2914_v54 = vpop.permute.xlu1 %1608 }
 0x288   : > { %v1414_v47 = vpop.permute.xlu0 %1413 }
 0x289   : > { %v1472_v62 = vsub.f32 %v2799_v52, %v1414_v47  ;;  %v2990_v47 = vld [vmem:[%s2940_s8 + $0x88] sm:$0xff] }
 0x28a   : > { %v1412_v36 = vpop.permute.xlu1 %1411 }
 0x28b   : > { %v1471_v7 = vsub.f32 %v2804_v63, %v1412_v36  ;;  %1788 = vperm.xlu0 %2114, %v1472_v62   ;;  %v2993_v36 = vld [vmem:[%s2940_s8 + $0xa0] sm:$0xff] }
 0x28c   : > { %v2918_v15 = vpop.permute.xlu0 %1623 }
 0x28d   : > { %1783 = vperm.xlu1 %2113, %v1471_v7   ;;  %v2996_v7 = vld [vmem:[%s2940_s8 + $0x98] sm:$0xff] }
 0x28e   : > { %v2920_v24 = vpop.permute.xlu1 %1618 }
 0x290   : > { %v1418_v48 = vpop.permute.xlu0 %1417 }
 0x291   : > { %v1474_v3 = vsub.f32 %v2819_v8, %v1418_v48  ;;  %v2999_v48 = vld [vmem:[%s2940_s8 + $0xa8] sm:$0xff] }
 0x292   : > { %v1416_v40 = vpop.permute.xlu1 %1415 }
 0x293   : > { %v1473_v43 = vsub.f32 %v2824_v53, %v1416_v40  ;;  %1798 = vperm.xlu0 %2114, %v1474_v3   ;;  %v3002_v3 = vld [vmem:[%s2940_s8 + $0xb0] sm:$0xff]  ;;  %v3005_v40 = vld [vmem:[%s2940_s8 + $0xc0] sm:$0xff] }
 0x294   : > { %v2924_v42 = vpop.permute.xlu0 %1633 }
 0x295   : > { %1793 = vperm.xlu1 %2113, %v1473_v43   ;;  %v3008_v43 = vld [vmem:[%s2940_s8 + $0xb8] sm:$0xff] }
 0x296   : > { %v2926_v52 = vpop.permute.xlu1 %1628 }
 0x298   : > { %v1422_v19 = vpop.permute.xlu0 %1421 }
 0x299   : > { %v1476_v63 = vsub.f32 %v2831_v59, %v1422_v19 }
 0x29a   : > { %v1420_v49 = vpop.permute.xlu1 %1419 }
 0x29b   : > { %v1475_v21 = vsub.f32 %v2836_v0, %v1420_v49  ;;  %1808 = vperm.xlu0 %2114, %v1476_v63   ;;  %v1507_v63 = vld [vmem:[#allocation2 + $0x8] sm:$0xff] }
 0x29c   : > { %v1426_v55 = vpop.permute.xlu0 %1425  ;;  %v1657_v49 = vmul.f32 %v2873_v46, %v1507_v63  ;;  %v1512_v63 = vld [vmem:[#allocation2 + $0x30] sm:$0xff] }
 0x29d   : > { %v1478_v8 = vsub.f32 %v2846_v17, %v1426_v55  ;;  %1803 = vperm.xlu1 %2113, %v1475_v21  }
 0x29e   : > { %v1424_v57 = vpop.permute.xlu1 %1423  ;;  %v1682_v55 = vadd.f32 %v1657_v49, %v1482_v13 }
 0x29f   : > { %v1477_v53 = vsub.f32 %v2842_v11, %v1424_v57  ;;  %1818 = vperm.xlu0 %2114, %v1478_v8   ;;  %v1506_v11 = vld [vmem:[#allocation2] sm:$0xff] }
 0x2a0   : > { %v1430_v58 = vpop.permute.xlu0 %1429  ;;  %v1656_v17 = vmul.f32 %v2868_v60, %v1506_v11  ;;  %v1485_v60 = vld [vmem:[%s2940_s8 + $0x20] sm:$0xff] }
 0x2a1   : > { %v1480_v29 = vsub.f32 %v2861_v33, %v1430_v58  ;;  %1813 = vperm.xlu1 %2113, %v1477_v53   ;;  %v1481_v33 = vld [vmem:[%s2940_s8] sm:$0xff]  ;;  %v1508_v53 = vld [vmem:[#allocation2 + $0x10] sm:$0xff] }
 0x2a2   : > { %v1428_v56 = vpop.permute.xlu1 %1427  ;;  %v1681_v18 = vadd.f32 %v1656_v17, %v1481_v33  ;;  %v1658_v58 = vmul.f32 %v2871_v25, %v1508_v53  ;;  %v1509_v33 = vld [vmem:[#allocation2 + $0x18] sm:$0xff]  ;;  %v1514_v53 = vld [vmem:[#allocation2 + $0x40] sm:$0xff] }
 0x2a3   : > { %v1479_v59 = vsub.f32 %v2856_v31, %v1428_v56  ;;  %1828 = vperm.xlu0 %2114, %v1480_v29   ;;  %v1510_v56 = vld [vmem:[#allocation2 + $0x20] sm:$0xff]  ;;  %v1659_v46 = vmul.f32 %v2878_v51, %v1509_v33 }
 0x2a4   : > { %v1683_v29 = vadd.f32 %v1658_v58, %v1483_v14  ;;  %v1660_v11 = vmul.f32 %v2876_v50, %v1510_v56  ;;  %v1662_v14 = vmul.f32 %v2882_v39, %v1512_v63  ;;  %v1511_v50 = vld [vmem:[#allocation2 + $0x28] sm:$0xff]  ;;  %v1664_v58 = vmul.f32 %v2888_v6, %v1514_v53  ;;  %v1513_v39 = vld [vmem:[#allocation2 + $0x38] sm:$0xff]  ;;  %v1522_v53 = vld [vmem:[#allocation2 + $0x80] sm:$0xff] }
 0x2a5   : > { %1823 = vperm.xlu1 %2113, %v1479_v59   ;;  %v1663_v56 = vmul.f32 %v2890_v9, %v1513_v39 }
 0x2a6   : > { %v1687_v51 = vadd.f32 %v1662_v14, %v1487_v12 }
 0x2a8   : > { %v2934_v0 = vpop.permute.xlu1 %1638 }
 0x2aa   : > { %v3012_v19 = vpop.permute.xlu0 %1643 }
 0x2ac   : > { %v2943_v31 = vpop.permute.xlu1 %1648 }
 0x2ae   : > { %v3015_v21 = vpop.permute.xlu0 %1653 }
 0x2b9   : > { %v1709_v5 = vpop.permute.xlu1 %1708 }
 0x2ba   : > { %v1831_v62 = vadd.f32 %v1709_v5, %v1681_v18  ;;  %v1685_v18 = vadd.f32 %v1660_v11, %v1485_v60  ;;  %v1688_v11 = vadd.f32 %v1663_v56, %v2960_v38 }
 0x2bc   : > { %1856 = vst.msk [vmem:[%s2950_s11] sm:$0xff] %vm854_vm1, %v1831_v62  ;;  %v1684_v62 = vadd.f32 %v1659_v46, %v1484_v23  ;;  %v1515_v46 = vld [vmem:[#allocation2 + $0x48] sm:$0xff] }
 0x2c8   : > { %v1714_v8 = vpop.permute.xlu0 %1713 }
 0x2c9   : > { %v1832_v57 = vadd.f32 %v1714_v8, %v1682_v55  ;;  %v1661_v55 = vmul.f32 %v2884_v1, %v1511_v50  ;;  %v1689_v1 = vadd.f32 %v1664_v58, %v1489_v41  ;;  %v1520_v50 = vld [vmem:[#allocation2 + $0x70] sm:$0xff] }
 0x2cb   : > { %1857 = vst.msk [vmem:[%s2950_s11 + $0x8] sm:$0xff] %vm854_vm1, %v1832_v57  ;;  %v1686_v57 = vadd.f32 %v1661_v55, %v1486_v45  ;;  %v1516_v45 = vld [vmem:[#allocation2 + $0x50] sm:$0xff] }
 0x2cc   : > { %v1666_v33 = vmul.f32 %v2894_v10, %v1516_v45 }
 0x2ce   : > { %v1691_v9 = vadd.f32 %v1666_v33, %v2963_v16  ;;  %v1526_v33 = vld [vmem:[#allocation2 + $0xa0] sm:$0xff] }
 0x2d4   : > { %v1719_v59 = vpop.permute.xlu1 %1718 }
 0x2d5   : > { %v1833_v17 = vadd.f32 %v1719_v59, %v1683_v29 }
 0x2d7   : > { %1858 = vst.msk [vmem:[%s2950_s11 + $0x10] sm:$0xff] %vm854_vm1, %v1833_v17 }
 0x2da   : > { %v1729_v5 = vpop.permute.xlu0 %1728 }
 0x2db   : > { %v1835_v13 = vadd.f32 %v1729_v5, %v1685_v18  ;;  %v1665_v18 = vmul.f32 %v2896_v34, %v1515_v46  ;;  %v1676_v46 = vmul.f32 %v2924_v42, %v1526_v33 }
 0x2dc   : > { %v1724_v25 = vpop.permute.xlu1 %1723 }
 0x2dd   : > { %v1834_v49 = vadd.f32 %v1724_v25, %v1684_v62  ;;  %1860 = vst.msk [vmem:[%s2950_s11 + $0x20] sm:$0xff] %vm854_vm1, %v1835_v13  ;;  %v1690_v38 = vadd.f32 %v1665_v18, %v2966_v22  ;;  %v1518_v13 = vld [vmem:[#allocation2 + $0x60] sm:$0xff]  ;;  %v1517_v25 = vld [vmem:[#allocation2 + $0x58] sm:$0xff] }
 0x2de   : > { %v1668_v10 = vmul.f32 %v2900_v20, %v1518_v13  ;;  %v1667_v34 = vmul.f32 %v2902_v61, %v1517_v25  ;;  %v1670_v20 = vmul.f32 %v2906_v30, %v1520_v50  ;;  %v1672_v30 = vmul.f32 %v2912_v2, %v1522_v53  ;;  %v1525_v18 = vld [vmem:[#allocation2 + $0x98] sm:$0xff] }
 0x2df   : > { %1859 = vst.msk [vmem:[%s2950_s11 + $0x18] sm:$0xff] %vm854_vm1, %v1834_v49 }
 0x2e0   : > { %v1693_v16 = vadd.f32 %v1668_v10, %v2969_v4  ;;  %v1692_v22 = vadd.f32 %v1667_v34, %v2972_v26  ;;  %v1695_v4 = vadd.f32 %v1670_v20, %v2975_v28  ;;  %v1697_v28 = vadd.f32 %v1672_v30, %v2981_v32 }
 0x2e2   : > { %v1739_v8 = vpop.permute.xlu0 %1738 }
 0x2e3   : > { %v1837_v60 = vadd.f32 %v1739_v8, %v1687_v51  ;;  %v1519_v8 = vld [vmem:[#allocation2 + $0x68] sm:$0xff] }
 0x2e4   : > { %v1734_v23 = vpop.permute.xlu1 %1733  ;;  %v1669_v61 = vmul.f32 %v2908_v27, %v1519_v8 }
 0x2e5   : > { %v1836_v29 = vadd.f32 %v1734_v23, %v1686_v57  ;;  %1862 = vst.msk [vmem:[%s2950_s11 + $0x30] sm:$0xff] %vm854_vm1, %v1837_v60 }
 0x2e6   : > { %v1694_v26 = vadd.f32 %v1669_v61, %v2978_v44 }
 0x2e7   : > { %1861 = vst.msk [vmem:[%s2950_s11 + $0x28] sm:$0xff] %vm854_vm1, %v1836_v29  ;;  %v1521_v29 = vld [vmem:[#allocation2 + $0x78] sm:$0xff] }
 0x2e8   : > { %v1671_v27 = vmul.f32 %v2914_v54, %v1521_v29 }
 0x2ea   : > { %v1749_v59 = vpop.permute.xlu0 %1748  ;;  %v1696_v44 = vadd.f32 %v1671_v27, %v2984_v37 }
 0x2eb   : > { %v1839_v12 = vadd.f32 %v1749_v59, %v1689_v1  ;;  %v1524_v1 = vld [vmem:[#allocation2 + $0x90] sm:$0xff] }
 0x2ec   : > { %v1744_v17 = vpop.permute.xlu1 %1743  ;;  %v1674_v2 = vmul.f32 %v2918_v15, %v1524_v1 }
 0x2ed   : > { %v1838_v6 = vadd.f32 %v1744_v17, %v1688_v11  ;;  %1864 = vst.msk [vmem:[%s2950_s11 + $0x40] sm:$0xff] %vm854_vm1, %v1839_v12  ;;  %v1523_v11 = vld [vmem:[#allocation2 + $0x88] sm:$0xff] }
 0x2ee   : > { %v1673_v54 = vmul.f32 %v2920_v24, %v1523_v11  ;;  %v1699_v32 = vadd.f32 %v1674_v2, %v2987_v35  ;;  %v1528_v24 = vld [vmem:[#allocation2 + $0xb0] sm:$0xff] }
 0x2ef   : > { %1863 = vst.msk [vmem:[%s2950_s11 + $0x38] sm:$0xff] %vm854_vm1, %v1838_v6  ;;  %v1678_v35 = vmul.f32 %v3012_v19, %v1528_v24 }
 0x2f0   : > { %v1698_v37 = vadd.f32 %v1673_v54, %v2990_v47 }
 0x2f1   : > { %v1703_v25 = vadd.f32 %v1678_v35, %v3002_v3 }
 0x2f2   : > { %v1759_v41 = vpop.permute.xlu0 %1758 }
 0x2f3   : > { %v1841_v5 = vadd.f32 %v1759_v41, %v1691_v9  ;;  %v1675_v9 = vmul.f32 %v2926_v52, %v1525_v18  ;;  %v1701_v41 = vadd.f32 %v1676_v46, %v2993_v36  ;;  %v1529_v36 = vld [vmem:[#allocation2 + $0xb8] sm:$0xff] }
 0x2f4   : > { %v1754_v62 = vpop.permute.xlu1 %1753 }
 0x2f5   : > { %v1840_v63 = vadd.f32 %v1754_v62, %v1690_v38  ;;  %1866 = vst.msk [vmem:[%s2950_s11 + $0x50] sm:$0xff] %vm854_vm1, %v1841_v5  ;;  %v1527_v5 = vld [vmem:[#allocation2 + $0xa8] sm:$0xff]  ;;  %v1700_v13 = vadd.f32 %v1675_v9, %v2996_v7  ;;  %v1530_v62 = vld [vmem:[#allocation2 + $0xc0] sm:$0xff] }
 0x2f6   : > { %v1677_v38 = vmul.f32 %v2934_v0, %v1527_v5  ;;  %v1680_v52 = vmul.f32 %v3015_v21, %v1530_v62  ;;  %v1679_v0 = vmul.f32 %v2943_v31, %v1529_v36 }
 0x2f7   : > { %1865 = vst.msk [vmem:[%s2950_s11 + $0x48] sm:$0xff] %vm854_vm1, %v1840_v63 }
 0x2f8   : > { %v1702_v7 = vadd.f32 %v1677_v38, %v2999_v48  ;;  %v1705_v21 = vadd.f32 %v1680_v52, %v3005_v40 }
 0x2fa   : > { %v1769_v14 = vpop.permute.xlu0 %1768 }
 0x2fb   : > { %v1843_v49 = vadd.f32 %v1769_v14, %v1693_v16 }
 0x2fc   : > { %v1764_v55 = vpop.permute.xlu1 %1763 }
 0x2fd   : > { %v1842_v51 = vadd.f32 %v1764_v55, %v1692_v22  ;;  %1868 = vst.msk [vmem:[%s2950_s11 + $0x60] sm:$0xff] %vm854_vm1, %v1843_v49  ;;  %v1704_v22 = vadd.f32 %v1679_v0, %v3008_v43 }
 0x2ff   : > { %1867 = vst.msk [vmem:[%s2950_s11 + $0x58] sm:$0xff] %vm854_vm1, %v1842_v51 }
 0x302   : > { %v1779_v60 = vpop.permute.xlu0 %1778 }
 0x303   : > { %v1845_v57 = vadd.f32 %v1779_v60, %v1695_v4 }
 0x304   : > { %v1774_v23 = vpop.permute.xlu1 %1773 }
 0x305   : > { %v1844_v58 = vadd.f32 %v1774_v23, %v1694_v26  ;;  %1870 = vst.msk [vmem:[%s2950_s11 + $0x70] sm:$0xff] %vm854_vm1, %v1845_v57 }
 0x307   : > { %1869 = vst.msk [vmem:[%s2950_s11 + $0x68] sm:$0xff] %vm854_vm1, %v1844_v58 }
 0x30a   : > { %v1789_v39 = vpop.permute.xlu0 %1788 }
 0x30b   : > { %v1847_v56 = vadd.f32 %v1789_v39, %v1697_v28 }
 0x30c   : > { %v1784_v59 = vpop.permute.xlu1 %1783 }
 0x30d   : > { %v1846_v12 = vadd.f32 %v1784_v59, %v1696_v44  ;;  %1872 = vst.msk [vmem:[%s2950_s11 + $0x80] sm:$0xff] %vm854_vm1, %v1847_v56 }
 0x30f   : > { %1871 = vst.msk [vmem:[%s2950_s11 + $0x78] sm:$0xff] %vm854_vm1, %v1846_v12 }
 0x312   : > { %v1799_v45 = vpop.permute.xlu0 %1798 }
 0x313   : > { %v1849_v17 = vadd.f32 %v1799_v45, %v1699_v32 }
 0x314   : > { %v1794_v6 = vpop.permute.xlu1 %1793 }
 0x315   : > { %v1848_v15 = vadd.f32 %v1794_v6, %v1698_v37  ;;  %1874 = vst.msk [vmem:[%s2950_s11 + $0x90] sm:$0xff] %vm854_vm1, %v1849_v17 }
 0x317   : > { %1873 = vst.msk [vmem:[%s2950_s11 + $0x88] sm:$0xff] %vm854_vm1, %v1848_v15 }
 0x31a   : > { %v1809_v47 = vpop.permute.xlu0 %1808 }
 0x31b   : > { %v1851_v42 = vadd.f32 %v1809_v47, %v1701_v41 }
 0x31c   : > { %v1804_v10 = vpop.permute.xlu1 %1803 }
 0x31d   : > { %v1850_v63 = vadd.f32 %v1804_v10, %v1700_v13  ;;  %1876 = vst.msk [vmem:[%s2950_s11 + $0xa0] sm:$0xff] %vm854_vm1, %v1851_v42 }
 0x31e   : > { %v1819_v19 = vpop.permute.xlu0 %1818 }
 0x31f   : > { %v1853_v34 = vadd.f32 %v1819_v19, %v1703_v25  ;;  %1875 = vst.msk [vmem:[%s2950_s11 + $0x98] sm:$0xff] %vm854_vm1, %v1850_v63 }
 0x320   : > { %v1814_v16 = vpop.permute.xlu1 %1813 }
 0x321   : > { %v1852_v14 = vadd.f32 %v1814_v16, %v1702_v7  ;;  %1878 = vst.msk [vmem:[%s2950_s11 + $0xb0] sm:$0xff] %vm854_vm1, %v1853_v34 }
 0x322   : > { %v1829_v3 = vpop.permute.xlu0 %1828 }
 0x323   : > { %v1855_v49 = vadd.f32 %v1829_v3, %v1705_v21  ;;  %1877 = vst.msk [vmem:[%s2950_s11 + $0xa8] sm:$0xff] %vm854_vm1, %v1852_v14 }
 0x324   : > { %v1824_v50 = vpop.permute.xlu1 %1823 }
 0x325   : > { %v1854_v55 = vadd.f32 %v1824_v50, %v1704_v22  ;;  %1880 = vst.msk [vmem:[%s2950_s11 + $0xc0] sm:$0xff] %vm854_vm1, %v1855_v49 }
 0x327   : > { %1879 = vst.msk [vmem:[%s2950_s11 + $0xb8] sm:$0xff] %vm854_vm1, %v1854_v55 }
 0x328 PF: > { %s14_s15 = sadd.s32 1, %s2171_s15  }
 0x329   : > { %p11_p4 = scmp.ge.s32.totalorder %s14_s15, 4  }
 0x32b   :  { %13 = sbr.rel (!%p11_p4) target bundleno = 1 (0x1), region = 72 }

</bundles_post_ra>
